<compile_context>
chip_gen: v5e
topology: v5e:2x2
jax: 0.10.0
libtpu: 0.0.40
codegen_flags: <defaults>
</compile_context>

<pallas_src>
import functools

import jax
import jax.numpy as jnp
from jax.experimental import pallas as pl
from jax.experimental.pallas import tpu as pltpu


def _actor_kernel(x_ref, wih_ref, whh_ref, bgx_ref, bhhn_ref,
                  whead_ref, bhead_ref, out_ref, *,
                  batch: int, seq: int, n_actions: int,
                  matmul_dtype=jnp.float32):
    B, T = batch, seq
    H = whh_ref.shape[0]
    md = matmul_dtype

    # ---- hoisted input projection (time-major rows): one MXU push, M = T*B ----
    gx_all = jnp.dot(x_ref[...].astype(md), wih_ref[...].astype(md),
                     preferred_element_type=jnp.float32) + bgx_ref[...]   # (T*B, 3H)

    b_hh_n = bhhn_ref[...]                                                # (1, H), 1 vreg

    # ---- GRU recurrence, fully unrolled; h carried in vregs ----
    # W_hh is read per-step via lane-aligned ref slices inside the dot (not
    # hoisted): 256-wide r|z pass + 128-wide n pass, streamed VMEM -> MXU.
    h = jnp.zeros((B, H), jnp.float32)
    for t in range(T):
        gx = gx_all[t * B:(t + 1) * B, :]                                 # (B, 3H) leading-row slice
        hm = h.astype(md)
        gh_rz = jnp.dot(hm, whh_ref[:, :2 * H].astype(md),
                        preferred_element_type=jnp.float32)               # (B, 2H)
        gh_n = jnp.dot(hm, whh_ref[:, 2 * H:].astype(md),
                       preferred_element_type=jnp.float32)                # (B, H)
        rz = jax.nn.sigmoid(gx[:, :2 * H] + gh_rz)
        r = rz[:, :H]
        z = rz[:, H:]
        n = jnp.tanh(gx[:, 2 * H:] + r * (gh_n + b_hh_n))
        h = (1.0 - z) * n + z * h

    # ---- fused mu/sigma head: one f32 matmul, one lane-dense (P=128) store ----
    head = jnp.dot(h, whead_ref[...],
                   preferred_element_type=jnp.float32) + bhead_ref[...]   # (B, P)
    col = jax.lax.broadcasted_iota(jnp.int32, head.shape, 1)
    sig = jnp.exp(jnp.clip(head, -20.0, 2.0))
    # cols [0, A): mu as-is; cols [A, P): clip-then-exp (padding cols discarded).
    out_ref[...] = jnp.where(col < n_actions, head, sig)


def prepare_params(params):
    """One-time parameter fusion/padding. Run when params change, NOT per call."""
    H = params["w_hh_T"].shape[0]
    A = params["w_mu_T"].shape[1]
    P = max(128, ((2 * A + 127) // 128) * 128)   # lane-dense fused-head width

    # Pre-combine r/z biases; n gate keeps b_hh_n separate (r* factor).
    b_gx = jnp.concatenate(
        [params["b_ih"][:, :2 * H] + params["b_hh"][:, :2 * H],
         params["b_ih"][:, 2 * H:]], axis=1)                              # (1, 3H)
    b_hh_n = params["b_hh"][:, 2 * H:]                                    # (1, H)

    # Fuse mu/sigma heads and pad to P output lanes for an unmasked store.
    w_head = jnp.concatenate([params["w_mu_T"], params["w_sig_T"]], axis=1)   # (H, 2A)
    b_head = jnp.concatenate([params["b_mu"], params["b_sig"]], axis=1)       # (1, 2A)
    w_head = jnp.pad(w_head, ((0, 0), (0, P - 2 * A)))
    b_head = jnp.pad(b_head, ((0, 0), (0, P - 2 * A)))

    fused = {"w_ih_T": params["w_ih_T"], "w_hh_T": params["w_hh_T"],
             "b_gx": b_gx, "b_hh_n": b_hh_n,
             "w_head": w_head, "b_head": b_head}
    return jax.tree_util.tree_map(jnp.asarray, fused), A


def actor_forward(state, fused, *, n_actions):
    """state: (B, T, D) float32. fused: output of prepare_params.
    Returns (mu, sigma), each (B, n_actions)."""
    B, T, D = state.shape
    P = fused["w_head"].shape[1]

    # Only per-call wrapper work: present x as time-major (T*B, D) rows so the
    # per-step gx slice in the kernel is a contiguous leading-row slice.
    x_tm = jnp.swapaxes(state, 0, 1).reshape(T * B, D)

    vmem = pl.BlockSpec(memory_space=pltpu.MemorySpace.VMEM)
    out = pl.pallas_call(
        functools.partial(_actor_kernel, batch=B, seq=T, n_actions=n_actions),
        out_shape=jax.ShapeDtypeStruct((B, P), jnp.float32),
        in_specs=[vmem] * 7,
        out_specs=vmem,
    )(x_tm, fused["w_ih_T"], fused["w_hh_T"], fused["b_gx"], fused["b_hh_n"],
      fused["w_head"], fused["b_head"])

    mu = out[:, :n_actions]
    sigma = out[:, n_actions:2 * n_actions]
    return mu, sigma


def actor_forward_ref(state, params):
    """Pure-JAX reference for correctness checking (PyTorch GRU semantics)."""
    B, T, D = state.shape
    H = params["w_hh_T"].shape[0]
    h = jnp.zeros((B, H), jnp.float32)
    for t in range(T):
        x_t = state[:, t, :]
        gx = x_t @ params["w_ih_T"] + params["b_ih"]
        gh = h @ params["w_hh_T"] + params["b_hh"]
        r = jax.nn.sigmoid(gx[:, 0:H] + gh[:, 0:H])
        z = jax.nn.sigmoid(gx[:, H:2 * H] + gh[:, H:2 * H])
        n = jnp.tanh(gx[:, 2 * H:3 * H] + r * gh[:, 2 * H:3 * H])
        h = (1.0 - z) * n + z * h
    mu = h @ params["w_mu_T"] + params["b_mu"]
    sg = jnp.exp(jnp.clip(h @ params["w_sig_T"] + params["b_sig"], -20.0, 2.0))
    return mu, sg


def init_params(key, input_size, hidden, n_actions):
    """Deterministic synthetic params, PyTorch-style uniform(-1/sqrt(H), 1/sqrt(H))."""
    ks = jax.random.split(key, 8)
    bound = 1.0 / jnp.sqrt(jnp.float32(hidden))
    u = lambda k, shape: jax.random.uniform(k, shape, jnp.float32, -bound, bound)
    # Store transposed weights so the kernel does x @ W^T directly.
    return {
        "w_ih_T": u(ks[0], (input_size, 3 * hidden)),   # = weight_ih_l0.T
        "w_hh_T": u(ks[1], (hidden, 3 * hidden)),       # = weight_hh_l0.T
        "b_ih":   u(ks[2], (1, 3 * hidden)),
        "b_hh":   u(ks[3], (1, 3 * hidden)),
        "w_mu_T": u(ks[4], (hidden, n_actions)),
        "b_mu":   u(ks[5], (1, n_actions)),
        "w_sig_T": u(ks[6], (hidden, n_actions)),
        "b_sig":  u(ks[7], (1, n_actions)),
    }


if __name__ == "__main__":
    B, T, D = 2, 8, 32        # batch, sequence length, feature dim (input_dims[1])
    HIDDEN = 128              # fc_dims
    N_ACTIONS = 1

    key = jax.random.PRNGKey(0)
    k_x, k_p = jax.random.split(key)
    state = jax.random.normal(k_x, (B, T, D), jnp.float32)
    params = init_params(k_p, D, HIDDEN, N_ACTIONS)

    # One-time parameter fusion/padding (amortized across forward() calls).
    fused, n_act = prepare_params(params)
    fused = jax.block_until_ready(fused)

    fwd = jax.jit(functools.partial(actor_forward, n_actions=n_act))
    mu, sigma = fwd(state, fused)
    jax.block_until_ready((mu, sigma))

    mu_ref, sigma_ref = actor_forward_ref(state, params)
    assert mu.shape == (B, N_ACTIONS) and sigma.shape == (B, N_ACTIONS)
    assert jnp.allclose(mu, mu_ref, atol=1e-4, rtol=1e-4), "mu mismatch"
    assert jnp.allclose(sigma, sigma_ref, atol=1e-4, rtol=1e-4), "sigma mismatch"

    print("KERNEL_OK")
</pallas_src>

<mosaic_0001>
module attributes {stable_mosaic.version = 11 : i64} {
  func.func @_actor_kernel(%arg0: memref<16x32xf32, #tpu.memory_space<vmem>>, %arg1: memref<32x384xf32, #tpu.memory_space<vmem>>, %arg2: memref<128x384xf32, #tpu.memory_space<vmem>>, %arg3: memref<1x384xf32, #tpu.memory_space<vmem>>, %arg4: memref<1x128xf32, #tpu.memory_space<vmem>>, %arg5: memref<128x128xf32, #tpu.memory_space<vmem>>, %arg6: memref<1x128xf32, #tpu.memory_space<vmem>>, %arg7: memref<2x128xf32, #tpu.memory_space<vmem>>) attributes {dimension_semantics = [], scalar_prefetch = 0 : i64, scratch_operands = 0 : i64, tpu.core_type = #tpu.core_type<tc>} {
    %c0 = arith.constant 0 : index
    %c0_0 = arith.constant 0 : index
    %0 = vector.load %arg0[%c0, %c0_0] : memref<16x32xf32, #tpu.memory_space<vmem>>, vector<16x32xf32>
    %c0_1 = arith.constant 0 : index
    %c0_2 = arith.constant 0 : index
    %1 = vector.load %arg1[%c0_1, %c0_2] : memref<32x384xf32, #tpu.memory_space<vmem>>, vector<32x384xf32>
    %cst = arith.constant dense<0.000000e+00> : vector<16x384xf32>
    %2 = tpu.matmul %0, %1, %cst {dimension_numbers = #tpu.dot_dimension_numbers<[1], [0], [0], [1], [0, 0, 1, 1], [], []>} : vector<16x32xf32>, vector<32x384xf32>, vector<16x384xf32> -> vector<16x384xf32>
    %c0_3 = arith.constant 0 : index
    %c0_4 = arith.constant 0 : index
    %3 = vector.load %arg3[%c0_3, %c0_4] : memref<1x384xf32, #tpu.memory_space<vmem>>, vector<1x384xf32>
    %4 = vector.broadcast %3 : vector<1x384xf32> to vector<16x384xf32>
    %5 = arith.addf %2, %4 : vector<16x384xf32>
    %c0_5 = arith.constant 0 : index
    %c0_6 = arith.constant 0 : index
    %6 = vector.load %arg4[%c0_5, %c0_6] : memref<1x128xf32, #tpu.memory_space<vmem>>, vector<1x128xf32>
    %cst_7 = arith.constant 0.000000e+00 : f32
    %7 = vector.broadcast %cst_7 : f32 to vector<2x128xf32>
    %8 = vector.extract_strided_slice %5 {offsets = [0, 0], sizes = [2, 384], strides = [1, 1]} : vector<16x384xf32> to vector<2x384xf32>
    %c0_8 = arith.constant 0 : index
    %c0_9 = arith.constant 0 : index
    %9 = vector.load %arg2[%c0_8, %c0_9] : memref<128x384xf32, #tpu.memory_space<vmem>>, vector<128x256xf32>
    %cst_10 = arith.constant dense<0.000000e+00> : vector<2x256xf32>
    %10 = tpu.matmul %7, %9, %cst_10 {dimension_numbers = #tpu.dot_dimension_numbers<[1], [0], [0], [1], [0, 0, 1, 1], [], []>} : vector<2x128xf32>, vector<128x256xf32>, vector<2x256xf32> -> vector<2x256xf32>
    %c0_11 = arith.constant 0 : index
    %c256 = arith.constant 256 : index
    %11 = vector.load %arg2[%c0_11, %c256] : memref<128x384xf32, #tpu.memory_space<vmem>>, vector<128x128xf32>
    %cst_12 = arith.constant dense<0.000000e+00> : vector<2x128xf32>
    %12 = tpu.matmul %7, %11, %cst_12 {dimension_numbers = #tpu.dot_dimension_numbers<[1], [0], [0], [1], [0, 0, 1, 1], [], []>} : vector<2x128xf32>, vector<128x128xf32>, vector<2x128xf32> -> vector<2x128xf32>
    %13 = vector.extract_strided_slice %8 {offsets = [0, 0], sizes = [2, 256], strides = [1, 1]} : vector<2x384xf32> to vector<2x256xf32>
    %14 = arith.addf %13, %10 : vector<2x256xf32>
    %15 = arith.negf %14 : vector<2x256xf32>
    %16 = math.exp %15 : vector<2x256xf32>
    %cst_13 = arith.constant 1.000000e+00 : f32
    %17 = vector.broadcast %cst_13 : f32 to vector<2x256xf32>
    %18 = arith.addf %17, %16 : vector<2x256xf32>
    %19 = arith.divf %17, %18 : vector<2x256xf32>
    %20 = vector.extract_strided_slice %19 {offsets = [0, 0], sizes = [2, 128], strides = [1, 1]} : vector<2x256xf32> to vector<2x128xf32>
    %21 = vector.extract_strided_slice %19 {offsets = [0, 128], sizes = [2, 128], strides = [1, 1]} : vector<2x256xf32> to vector<2x128xf32>
    %22 = vector.extract_strided_slice %8 {offsets = [0, 256], sizes = [2, 128], strides = [1, 1]} : vector<2x384xf32> to vector<2x128xf32>
    %23 = vector.broadcast %6 : vector<1x128xf32> to vector<2x128xf32>
    %24 = arith.addf %12, %23 : vector<2x128xf32>
    %25 = arith.mulf %20, %24 : vector<2x128xf32>
    %26 = arith.addf %22, %25 : vector<2x128xf32>
    %27 = math.tanh %26 : vector<2x128xf32>
    %cst_14 = arith.constant 1.000000e+00 : f32
    %28 = vector.broadcast %cst_14 : f32 to vector<2x128xf32>
    %29 = arith.subf %28, %21 : vector<2x128xf32>
    %30 = arith.mulf %29, %27 : vector<2x128xf32>
    %31 = arith.mulf %21, %7 : vector<2x128xf32>
    %32 = arith.addf %30, %31 : vector<2x128xf32>
    %33 = vector.extract_strided_slice %5 {offsets = [2, 0], sizes = [2, 384], strides = [1, 1]} : vector<16x384xf32> to vector<2x384xf32>
    %c0_15 = arith.constant 0 : index
    %c0_16 = arith.constant 0 : index
    %34 = vector.load %arg2[%c0_15, %c0_16] : memref<128x384xf32, #tpu.memory_space<vmem>>, vector<128x256xf32>
    %cst_17 = arith.constant dense<0.000000e+00> : vector<2x256xf32>
    %35 = tpu.matmul %32, %34, %cst_17 {dimension_numbers = #tpu.dot_dimension_numbers<[1], [0], [0], [1], [0, 0, 1, 1], [], []>} : vector<2x128xf32>, vector<128x256xf32>, vector<2x256xf32> -> vector<2x256xf32>
    %c0_18 = arith.constant 0 : index
    %c256_19 = arith.constant 256 : index
    %36 = vector.load %arg2[%c0_18, %c256_19] : memref<128x384xf32, #tpu.memory_space<vmem>>, vector<128x128xf32>
    %cst_20 = arith.constant dense<0.000000e+00> : vector<2x128xf32>
    %37 = tpu.matmul %32, %36, %cst_20 {dimension_numbers = #tpu.dot_dimension_numbers<[1], [0], [0], [1], [0, 0, 1, 1], [], []>} : vector<2x128xf32>, vector<128x128xf32>, vector<2x128xf32> -> vector<2x128xf32>
    %38 = vector.extract_strided_slice %33 {offsets = [0, 0], sizes = [2, 256], strides = [1, 1]} : vector<2x384xf32> to vector<2x256xf32>
    %39 = arith.addf %38, %35 : vector<2x256xf32>
    %40 = arith.negf %39 : vector<2x256xf32>
    %41 = math.exp %40 : vector<2x256xf32>
    %cst_21 = arith.constant 1.000000e+00 : f32
    %42 = vector.broadcast %cst_21 : f32 to vector<2x256xf32>
    %43 = arith.addf %42, %41 : vector<2x256xf32>
    %44 = arith.divf %42, %43 : vector<2x256xf32>
    %45 = vector.extract_strided_slice %44 {offsets = [0, 0], sizes = [2, 128], strides = [1, 1]} : vector<2x256xf32> to vector<2x128xf32>
    %46 = vector.extract_strided_slice %44 {offsets = [0, 128], sizes = [2, 128], strides = [1, 1]} : vector<2x256xf32> to vector<2x128xf32>
    %47 = vector.extract_strided_slice %33 {offsets = [0, 256], sizes = [2, 128], strides = [1, 1]} : vector<2x384xf32> to vector<2x128xf32>
    %48 = vector.broadcast %6 : vector<1x128xf32> to vector<2x128xf32>
    %49 = arith.addf %37, %48 : vector<2x128xf32>
    %50 = arith.mulf %45, %49 : vector<2x128xf32>
    %51 = arith.addf %47, %50 : vector<2x128xf32>
    %52 = math.tanh %51 : vector<2x128xf32>
    %cst_22 = arith.constant 1.000000e+00 : f32
    %53 = vector.broadcast %cst_22 : f32 to vector<2x128xf32>
    %54 = arith.subf %53, %46 : vector<2x128xf32>
    %55 = arith.mulf %54, %52 : vector<2x128xf32>
    %56 = arith.mulf %46, %32 : vector<2x128xf32>
    %57 = arith.addf %55, %56 : vector<2x128xf32>
    %58 = vector.extract_strided_slice %5 {offsets = [4, 0], sizes = [2, 384], strides = [1, 1]} : vector<16x384xf32> to vector<2x384xf32>
    %c0_23 = arith.constant 0 : index
    %c0_24 = arith.constant 0 : index
    %59 = vector.load %arg2[%c0_23, %c0_24] : memref<128x384xf32, #tpu.memory_space<vmem>>, vector<128x256xf32>
    %cst_25 = arith.constant dense<0.000000e+00> : vector<2x256xf32>
    %60 = tpu.matmul %57, %59, %cst_25 {dimension_numbers = #tpu.dot_dimension_numbers<[1], [0], [0], [1], [0, 0, 1, 1], [], []>} : vector<2x128xf32>, vector<128x256xf32>, vector<2x256xf32> -> vector<2x256xf32>
    %c0_26 = arith.constant 0 : index
    %c256_27 = arith.constant 256 : index
    %61 = vector.load %arg2[%c0_26, %c256_27] : memref<128x384xf32, #tpu.memory_space<vmem>>, vector<128x128xf32>
    %cst_28 = arith.constant dense<0.000000e+00> : vector<2x128xf32>
    %62 = tpu.matmul %57, %61, %cst_28 {dimension_numbers = #tpu.dot_dimension_numbers<[1], [0], [0], [1], [0, 0, 1, 1], [], []>} : vector<2x128xf32>, vector<128x128xf32>, vector<2x128xf32> -> vector<2x128xf32>
    %63 = vector.extract_strided_slice %58 {offsets = [0, 0], sizes = [2, 256], strides = [1, 1]} : vector<2x384xf32> to vector<2x256xf32>
    %64 = arith.addf %63, %60 : vector<2x256xf32>
    %65 = arith.negf %64 : vector<2x256xf32>
    %66 = math.exp %65 : vector<2x256xf32>
    %cst_29 = arith.constant 1.000000e+00 : f32
    %67 = vector.broadcast %cst_29 : f32 to vector<2x256xf32>
    %68 = arith.addf %67, %66 : vector<2x256xf32>
    %69 = arith.divf %67, %68 : vector<2x256xf32>
    %70 = vector.extract_strided_slice %69 {offsets = [0, 0], sizes = [2, 128], strides = [1, 1]} : vector<2x256xf32> to vector<2x128xf32>
    %71 = vector.extract_strided_slice %69 {offsets = [0, 128], sizes = [2, 128], strides = [1, 1]} : vector<2x256xf32> to vector<2x128xf32>
    %72 = vector.extract_strided_slice %58 {offsets = [0, 256], sizes = [2, 128], strides = [1, 1]} : vector<2x384xf32> to vector<2x128xf32>
    %73 = vector.broadcast %6 : vector<1x128xf32> to vector<2x128xf32>
    %74 = arith.addf %62, %73 : vector<2x128xf32>
    %75 = arith.mulf %70, %74 : vector<2x128xf32>
    %76 = arith.addf %72, %75 : vector<2x128xf32>
    %77 = math.tanh %76 : vector<2x128xf32>
    %cst_30 = arith.constant 1.000000e+00 : f32
    %78 = vector.broadcast %cst_30 : f32 to vector<2x128xf32>
    %79 = arith.subf %78, %71 : vector<2x128xf32>
    %80 = arith.mulf %79, %77 : vector<2x128xf32>
    %81 = arith.mulf %71, %57 : vector<2x128xf32>
    %82 = arith.addf %80, %81 : vector<2x128xf32>
    %83 = vector.extract_strided_slice %5 {offsets = [6, 0], sizes = [2, 384], strides = [1, 1]} : vector<16x384xf32> to vector<2x384xf32>
    %c0_31 = arith.constant 0 : index
    %c0_32 = arith.constant 0 : index
    %84 = vector.load %arg2[%c0_31, %c0_32] : memref<128x384xf32, #tpu.memory_space<vmem>>, vector<128x256xf32>
    %cst_33 = arith.constant dense<0.000000e+00> : vector<2x256xf32>
    %85 = tpu.matmul %82, %84, %cst_33 {dimension_numbers = #tpu.dot_dimension_numbers<[1], [0], [0], [1], [0, 0, 1, 1], [], []>} : vector<2x128xf32>, vector<128x256xf32>, vector<2x256xf32> -> vector<2x256xf32>
    %c0_34 = arith.constant 0 : index
    %c256_35 = arith.constant 256 : index
    %86 = vector.load %arg2[%c0_34, %c256_35] : memref<128x384xf32, #tpu.memory_space<vmem>>, vector<128x128xf32>
    %cst_36 = arith.constant dense<0.000000e+00> : vector<2x128xf32>
    %87 = tpu.matmul %82, %86, %cst_36 {dimension_numbers = #tpu.dot_dimension_numbers<[1], [0], [0], [1], [0, 0, 1, 1], [], []>} : vector<2x128xf32>, vector<128x128xf32>, vector<2x128xf32> -> vector<2x128xf32>
    %88 = vector.extract_strided_slice %83 {offsets = [0, 0], sizes = [2, 256], strides = [1, 1]} : vector<2x384xf32> to vector<2x256xf32>
    %89 = arith.addf %88, %85 : vector<2x256xf32>
    %90 = arith.negf %89 : vector<2x256xf32>
    %91 = math.exp %90 : vector<2x256xf32>
    %cst_37 = arith.constant 1.000000e+00 : f32
    %92 = vector.broadcast %cst_37 : f32 to vector<2x256xf32>
    %93 = arith.addf %92, %91 : vector<2x256xf32>
    %94 = arith.divf %92, %93 : vector<2x256xf32>
    %95 = vector.extract_strided_slice %94 {offsets = [0, 0], sizes = [2, 128], strides = [1, 1]} : vector<2x256xf32> to vector<2x128xf32>
    %96 = vector.extract_strided_slice %94 {offsets = [0, 128], sizes = [2, 128], strides = [1, 1]} : vector<2x256xf32> to vector<2x128xf32>
    %97 = vector.extract_strided_slice %83 {offsets = [0, 256], sizes = [2, 128], strides = [1, 1]} : vector<2x384xf32> to vector<2x128xf32>
    %98 = vector.broadcast %6 : vector<1x128xf32> to vector<2x128xf32>
    %99 = arith.addf %87, %98 : vector<2x128xf32>
    %100 = arith.mulf %95, %99 : vector<2x128xf32>
    %101 = arith.addf %97, %100 : vector<2x128xf32>
    %102 = math.tanh %101 : vector<2x128xf32>
    %cst_38 = arith.constant 1.000000e+00 : f32
    %103 = vector.broadcast %cst_38 : f32 to vector<2x128xf32>
    %104 = arith.subf %103, %96 : vector<2x128xf32>
    %105 = arith.mulf %104, %102 : vector<2x128xf32>
    %106 = arith.mulf %96, %82 : vector<2x128xf32>
    %107 = arith.addf %105, %106 : vector<2x128xf32>
    %108 = vector.extract_strided_slice %5 {offsets = [8, 0], sizes = [2, 384], strides = [1, 1]} : vector<16x384xf32> to vector<2x384xf32>
    %c0_39 = arith.constant 0 : index
    %c0_40 = arith.constant 0 : index
    %109 = vector.load %arg2[%c0_39, %c0_40] : memref<128x384xf32, #tpu.memory_space<vmem>>, vector<128x256xf32>
    %cst_41 = arith.constant dense<0.000000e+00> : vector<2x256xf32>
    %110 = tpu.matmul %107, %109, %cst_41 {dimension_numbers = #tpu.dot_dimension_numbers<[1], [0], [0], [1], [0, 0, 1, 1], [], []>} : vector<2x128xf32>, vector<128x256xf32>, vector<2x256xf32> -> vector<2x256xf32>
    %c0_42 = arith.constant 0 : index
    %c256_43 = arith.constant 256 : index
    %111 = vector.load %arg2[%c0_42, %c256_43] : memref<128x384xf32, #tpu.memory_space<vmem>>, vector<128x128xf32>
    %cst_44 = arith.constant dense<0.000000e+00> : vector<2x128xf32>
    %112 = tpu.matmul %107, %111, %cst_44 {dimension_numbers = #tpu.dot_dimension_numbers<[1], [0], [0], [1], [0, 0, 1, 1], [], []>} : vector<2x128xf32>, vector<128x128xf32>, vector<2x128xf32> -> vector<2x128xf32>
    %113 = vector.extract_strided_slice %108 {offsets = [0, 0], sizes = [2, 256], strides = [1, 1]} : vector<2x384xf32> to vector<2x256xf32>
    %114 = arith.addf %113, %110 : vector<2x256xf32>
    %115 = arith.negf %114 : vector<2x256xf32>
    %116 = math.exp %115 : vector<2x256xf32>
    %cst_45 = arith.constant 1.000000e+00 : f32
    %117 = vector.broadcast %cst_45 : f32 to vector<2x256xf32>
    %118 = arith.addf %117, %116 : vector<2x256xf32>
    %119 = arith.divf %117, %118 : vector<2x256xf32>
    %120 = vector.extract_strided_slice %119 {offsets = [0, 0], sizes = [2, 128], strides = [1, 1]} : vector<2x256xf32> to vector<2x128xf32>
    %121 = vector.extract_strided_slice %119 {offsets = [0, 128], sizes = [2, 128], strides = [1, 1]} : vector<2x256xf32> to vector<2x128xf32>
    %122 = vector.extract_strided_slice %108 {offsets = [0, 256], sizes = [2, 128], strides = [1, 1]} : vector<2x384xf32> to vector<2x128xf32>
    %123 = vector.broadcast %6 : vector<1x128xf32> to vector<2x128xf32>
    %124 = arith.addf %112, %123 : vector<2x128xf32>
    %125 = arith.mulf %120, %124 : vector<2x128xf32>
    %126 = arith.addf %122, %125 : vector<2x128xf32>
    %127 = math.tanh %126 : vector<2x128xf32>
    %cst_46 = arith.constant 1.000000e+00 : f32
    %128 = vector.broadcast %cst_46 : f32 to vector<2x128xf32>
    %129 = arith.subf %128, %121 : vector<2x128xf32>
    %130 = arith.mulf %129, %127 : vector<2x128xf32>
    %131 = arith.mulf %121, %107 : vector<2x128xf32>
    %132 = arith.addf %130, %131 : vector<2x128xf32>
    %133 = vector.extract_strided_slice %5 {offsets = [10, 0], sizes = [2, 384], strides = [1, 1]} : vector<16x384xf32> to vector<2x384xf32>
    %c0_47 = arith.constant 0 : index
    %c0_48 = arith.constant 0 : index
    %134 = vector.load %arg2[%c0_47, %c0_48] : memref<128x384xf32, #tpu.memory_space<vmem>>, vector<128x256xf32>
    %cst_49 = arith.constant dense<0.000000e+00> : vector<2x256xf32>
    %135 = tpu.matmul %132, %134, %cst_49 {dimension_numbers = #tpu.dot_dimension_numbers<[1], [0], [0], [1], [0, 0, 1, 1], [], []>} : vector<2x128xf32>, vector<128x256xf32>, vector<2x256xf32> -> vector<2x256xf32>
    %c0_50 = arith.constant 0 : index
    %c256_51 = arith.constant 256 : index
    %136 = vector.load %arg2[%c0_50, %c256_51] : memref<128x384xf32, #tpu.memory_space<vmem>>, vector<128x128xf32>
    %cst_52 = arith.constant dense<0.000000e+00> : vector<2x128xf32>
    %137 = tpu.matmul %132, %136, %cst_52 {dimension_numbers = #tpu.dot_dimension_numbers<[1], [0], [0], [1], [0, 0, 1, 1], [], []>} : vector<2x128xf32>, vector<128x128xf32>, vector<2x128xf32> -> vector<2x128xf32>
    %138 = vector.extract_strided_slice %133 {offsets = [0, 0], sizes = [2, 256], strides = [1, 1]} : vector<2x384xf32> to vector<2x256xf32>
    %139 = arith.addf %138, %135 : vector<2x256xf32>
    %140 = arith.negf %139 : vector<2x256xf32>
    %141 = math.exp %140 : vector<2x256xf32>
    %cst_53 = arith.constant 1.000000e+00 : f32
    %142 = vector.broadcast %cst_53 : f32 to vector<2x256xf32>
    %143 = arith.addf %142, %141 : vector<2x256xf32>
    %144 = arith.divf %142, %143 : vector<2x256xf32>
    %145 = vector.extract_strided_slice %144 {offsets = [0, 0], sizes = [2, 128], strides = [1, 1]} : vector<2x256xf32> to vector<2x128xf32>
    %146 = vector.extract_strided_slice %144 {offsets = [0, 128], sizes = [2, 128], strides = [1, 1]} : vector<2x256xf32> to vector<2x128xf32>
    %147 = vector.extract_strided_slice %133 {offsets = [0, 256], sizes = [2, 128], strides = [1, 1]} : vector<2x384xf32> to vector<2x128xf32>
    %148 = vector.broadcast %6 : vector<1x128xf32> to vector<2x128xf32>
    %149 = arith.addf %137, %148 : vector<2x128xf32>
    %150 = arith.mulf %145, %149 : vector<2x128xf32>
    %151 = arith.addf %147, %150 : vector<2x128xf32>
    %152 = math.tanh %151 : vector<2x128xf32>
    %cst_54 = arith.constant 1.000000e+00 : f32
    %153 = vector.broadcast %cst_54 : f32 to vector<2x128xf32>
    %154 = arith.subf %153, %146 : vector<2x128xf32>
    %155 = arith.mulf %154, %152 : vector<2x128xf32>
    %156 = arith.mulf %146, %132 : vector<2x128xf32>
    %157 = arith.addf %155, %156 : vector<2x128xf32>
    %158 = vector.extract_strided_slice %5 {offsets = [12, 0], sizes = [2, 384], strides = [1, 1]} : vector<16x384xf32> to vector<2x384xf32>
    %c0_55 = arith.constant 0 : index
    %c0_56 = arith.constant 0 : index
    %159 = vector.load %arg2[%c0_55, %c0_56] : memref<128x384xf32, #tpu.memory_space<vmem>>, vector<128x256xf32>
    %cst_57 = arith.constant dense<0.000000e+00> : vector<2x256xf32>
    %160 = tpu.matmul %157, %159, %cst_57 {dimension_numbers = #tpu.dot_dimension_numbers<[1], [0], [0], [1], [0, 0, 1, 1], [], []>} : vector<2x128xf32>, vector<128x256xf32>, vector<2x256xf32> -> vector<2x256xf32>
    %c0_58 = arith.constant 0 : index
    %c256_59 = arith.constant 256 : index
    %161 = vector.load %arg2[%c0_58, %c256_59] : memref<128x384xf32, #tpu.memory_space<vmem>>, vector<128x128xf32>
    %cst_60 = arith.constant dense<0.000000e+00> : vector<2x128xf32>
    %162 = tpu.matmul %157, %161, %cst_60 {dimension_numbers = #tpu.dot_dimension_numbers<[1], [0], [0], [1], [0, 0, 1, 1], [], []>} : vector<2x128xf32>, vector<128x128xf32>, vector<2x128xf32> -> vector<2x128xf32>
    %163 = vector.extract_strided_slice %158 {offsets = [0, 0], sizes = [2, 256], strides = [1, 1]} : vector<2x384xf32> to vector<2x256xf32>
    %164 = arith.addf %163, %160 : vector<2x256xf32>
    %165 = arith.negf %164 : vector<2x256xf32>
    %166 = math.exp %165 : vector<2x256xf32>
    %cst_61 = arith.constant 1.000000e+00 : f32
    %167 = vector.broadcast %cst_61 : f32 to vector<2x256xf32>
    %168 = arith.addf %167, %166 : vector<2x256xf32>
    %169 = arith.divf %167, %168 : vector<2x256xf32>
    %170 = vector.extract_strided_slice %169 {offsets = [0, 0], sizes = [2, 128], strides = [1, 1]} : vector<2x256xf32> to vector<2x128xf32>
    %171 = vector.extract_strided_slice %169 {offsets = [0, 128], sizes = [2, 128], strides = [1, 1]} : vector<2x256xf32> to vector<2x128xf32>
    %172 = vector.extract_strided_slice %158 {offsets = [0, 256], sizes = [2, 128], strides = [1, 1]} : vector<2x384xf32> to vector<2x128xf32>
    %173 = vector.broadcast %6 : vector<1x128xf32> to vector<2x128xf32>
    %174 = arith.addf %162, %173 : vector<2x128xf32>
    %175 = arith.mulf %170, %174 : vector<2x128xf32>
    %176 = arith.addf %172, %175 : vector<2x128xf32>
    %177 = math.tanh %176 : vector<2x128xf32>
    %cst_62 = arith.constant 1.000000e+00 : f32
    %178 = vector.broadcast %cst_62 : f32 to vector<2x128xf32>
    %179 = arith.subf %178, %171 : vector<2x128xf32>
    %180 = arith.mulf %179, %177 : vector<2x128xf32>
    %181 = arith.mulf %171, %157 : vector<2x128xf32>
    %182 = arith.addf %180, %181 : vector<2x128xf32>
    %183 = vector.extract_strided_slice %5 {offsets = [14, 0], sizes = [2, 384], strides = [1, 1]} : vector<16x384xf32> to vector<2x384xf32>
    %c0_63 = arith.constant 0 : index
    %c0_64 = arith.constant 0 : index
    %184 = vector.load %arg2[%c0_63, %c0_64] : memref<128x384xf32, #tpu.memory_space<vmem>>, vector<128x256xf32>
    %cst_65 = arith.constant dense<0.000000e+00> : vector<2x256xf32>
    %185 = tpu.matmul %182, %184, %cst_65 {dimension_numbers = #tpu.dot_dimension_numbers<[1], [0], [0], [1], [0, 0, 1, 1], [], []>} : vector<2x128xf32>, vector<128x256xf32>, vector<2x256xf32> -> vector<2x256xf32>
    %c0_66 = arith.constant 0 : index
    %c256_67 = arith.constant 256 : index
    %186 = vector.load %arg2[%c0_66, %c256_67] : memref<128x384xf32, #tpu.memory_space<vmem>>, vector<128x128xf32>
    %cst_68 = arith.constant dense<0.000000e+00> : vector<2x128xf32>
    %187 = tpu.matmul %182, %186, %cst_68 {dimension_numbers = #tpu.dot_dimension_numbers<[1], [0], [0], [1], [0, 0, 1, 1], [], []>} : vector<2x128xf32>, vector<128x128xf32>, vector<2x128xf32> -> vector<2x128xf32>
    %188 = vector.extract_strided_slice %183 {offsets = [0, 0], sizes = [2, 256], strides = [1, 1]} : vector<2x384xf32> to vector<2x256xf32>
    %189 = arith.addf %188, %185 : vector<2x256xf32>
    %190 = arith.negf %189 : vector<2x256xf32>
    %191 = math.exp %190 : vector<2x256xf32>
    %cst_69 = arith.constant 1.000000e+00 : f32
    %192 = vector.broadcast %cst_69 : f32 to vector<2x256xf32>
    %193 = arith.addf %192, %191 : vector<2x256xf32>
    %194 = arith.divf %192, %193 : vector<2x256xf32>
    %195 = vector.extract_strided_slice %194 {offsets = [0, 0], sizes = [2, 128], strides = [1, 1]} : vector<2x256xf32> to vector<2x128xf32>
    %196 = vector.extract_strided_slice %194 {offsets = [0, 128], sizes = [2, 128], strides = [1, 1]} : vector<2x256xf32> to vector<2x128xf32>
    %197 = vector.extract_strided_slice %183 {offsets = [0, 256], sizes = [2, 128], strides = [1, 1]} : vector<2x384xf32> to vector<2x128xf32>
    %198 = vector.broadcast %6 : vector<1x128xf32> to vector<2x128xf32>
    %199 = arith.addf %187, %198 : vector<2x128xf32>
    %200 = arith.mulf %195, %199 : vector<2x128xf32>
    %201 = arith.addf %197, %200 : vector<2x128xf32>
    %202 = math.tanh %201 : vector<2x128xf32>
    %cst_70 = arith.constant 1.000000e+00 : f32
    %203 = vector.broadcast %cst_70 : f32 to vector<2x128xf32>
    %204 = arith.subf %203, %196 : vector<2x128xf32>
    %205 = arith.mulf %204, %202 : vector<2x128xf32>
    %206 = arith.mulf %196, %182 : vector<2x128xf32>
    %207 = arith.addf %205, %206 : vector<2x128xf32>
    %c0_71 = arith.constant 0 : index
    %c0_72 = arith.constant 0 : index
    %208 = vector.load %arg5[%c0_71, %c0_72] : memref<128x128xf32, #tpu.memory_space<vmem>>, vector<128x128xf32>
    %cst_73 = arith.constant dense<0.000000e+00> : vector<2x128xf32>
    %209 = tpu.matmul %207, %208, %cst_73 {dimension_numbers = #tpu.dot_dimension_numbers<[1], [0], [0], [1], [0, 0, 1, 1], [], []>} : vector<2x128xf32>, vector<128x128xf32>, vector<2x128xf32> -> vector<2x128xf32>
    %c0_74 = arith.constant 0 : index
    %c0_75 = arith.constant 0 : index
    %210 = vector.load %arg6[%c0_74, %c0_75] : memref<1x128xf32, #tpu.memory_space<vmem>>, vector<1x128xf32>
    %211 = vector.broadcast %210 : vector<1x128xf32> to vector<2x128xf32>
    %212 = arith.addf %209, %211 : vector<2x128xf32>
    %213 = tpu.iota {dimensions = array<i32: 1>} : vector<2x128xi32>
    %cst_76 = arith.constant -2.000000e+01 : f32
    %cst_77 = arith.constant 2.000000e+00 : f32
    %214 = vector.broadcast %cst_76 : f32 to vector<2x128xf32>
    %215 = arith.maximumf %214, %212 : vector<2x128xf32>
    %216 = vector.broadcast %cst_77 : f32 to vector<2x128xf32>
    %217 = arith.minimumf %216, %215 : vector<2x128xf32>
    %218 = math.exp %217 : vector<2x128xf32>
    %c1_i32 = arith.constant 1 : i32
    %219 = vector.broadcast %c1_i32 : i32 to vector<2x128xi32>
    %220 = arith.cmpi slt, %213, %219 : vector<2x128xi32>
    %221 = arith.select %220, %212, %218 : vector<2x128xi1>, vector<2x128xf32>
    %c0_78 = arith.constant 0 : index
    %c0_79 = arith.constant 0 : index
    %222 = vector.load %arg7[%c0_78, %c0_79] : memref<2x128xf32, #tpu.memory_space<vmem>>, vector<2x128xf32>
    tpu.vector_store %arg7[%c0_78, %c0_79], %221 {strides = array<i32>} : memref<2x128xf32, #tpu.memory_space<vmem>>, vector<2x128xf32>,
    return
  }
}

</mosaic_0001>

<bundles_post_ra>
// kernel: actor_forward.1
= control target key start
LH: loop header
LB: loop body
LE: loop exit
PB: predicated region body
PF: predicated region fallthrough
CT: control target
= control target key end

     0   :  { %12 = vsyncpa [#allocation3], 0  ;;  %s2189_s0 = inlined_call_operand.vmem [shape: f32[16,32], index: 0, kind: input, shape index: {}]   ;;  %s2190_s1 = inlined_call_operand.hbm [shape: f32[32,384], index: 1, kind: input, shape index: {}]   ;;  %s2191_s2 = inlined_call_operand.hbm [shape: f32[128,384], index: 2, kind: input, shape index: {}]   ;;  %s2192_s3 = inlined_call_operand.vmem [shape: f32[1,384], index: 3, kind: input, shape index: {}]   ;;  %s2193_s4 = inlined_call_operand.vmem [shape: f32[1,128], index: 4, kind: input, shape index: {}]   ;;  %s2194_s5 = inlined_call_operand.hbm [shape: f32[128,128], index: 5, kind: input, shape index: {}]   ;;  %s2195_s6 = inlined_call_operand.vmem [shape: f32[1,128], index: 6, kind: input, shape index: {}]   ;;  %s2196_s7 = inlined_call_operand.vmem [shape: f32[2,128], index: 7, kind: output, shape index: {}]  }
   0x1   :  { %13 = vsyncpa [#allocation5], 0  ;;  %s33_s26 = sshll.u32 %s2191_s2, 4  ;;  %s1459_s27 = smov [#allocation4]   ;;  %s34_s26 = int_to_ptr.hbm [resolvable:$true] %s33_s26 }
   0x2   :  { %s35_s28 = sshll.u32 %s1459_s27, 4  ;;  %s20_s8 = sshll.u32 %s2190_s1, 4  ;;  %s36_s28 = int_to_ptr.vmem [resolvable:$true] %s35_s28  ;;  %s21_s8 = int_to_ptr.hbm [resolvable:$true] %s20_s8 }
   0x3   :  { %s1460_s9 = smov 384   ;;  %s1461_s10 = smov 24  }
   0x4   :  { %41 = dma.hbm_to_vmem [thread:$0]  %s34_s26, 6144, %s36_s28, [#allocation5], %s1460_s9, %s1460_s9, %s1461_s10  }
   0x5   :  { %s1462_s11 = smov [#allocation2]   ;;  %s50_s15 = sshll.u32 %s2194_s5, 4  ;;  %s51_s15 = int_to_ptr.hbm [resolvable:$true] %s50_s15 }
   0x6   :  { %s22_s12 = sshll.u32 %s1462_s11, 4  ;;  %s1463_s2 = smov [#allocation6]   ;;  %s23_s12 = int_to_ptr.vmem [resolvable:$true] %s22_s12 }
   0x7   :  { %28 = dma.hbm_to_vmem [thread:$0]  %s21_s8, 1536, %s23_s12, [#allocation3], %s1460_s9, %s1460_s9, %s1461_s10  }
   0x8   :  { %s52_s16 = sshll.u32 %s1463_s2, 4  ;;  %s1464_s17 = smov 128   ;;  %s53_s16 = int_to_ptr.vmem [resolvable:$true] %s52_s16 }
   0x9   :  { %s1465_s18 = smov 8  }
   0xa   :  { %58 = dma.hbm_to_vmem [thread:$0]  %s51_s15, 2048, %s53_s16, [#allocation5], %s1464_s17, %s1464_s17, %s1465_s18  }
   0xb   :  { %1455 = dma.done.wait [#allocation3], 1536  }
   0xc   :  { %1456 = vsyncadd [#allocation3], 4294965760 }
   0xd   :  { %1457 = dma.done.wait [#allocation5], 8192  }
   0xe   :  { %1458 = vsyncadd [#allocation5], 4294959104  ;;  %v84_v0 = vld [vmem:[#allocation2 + $0x48] sm:$0xff]  ;;  %v81_v2 = vld [vmem:[#allocation2 + $0x30] sm:$0xff]  ;;  %vm95_vm0 = vcmask 261120   ;;  %v1466_v52 = vmov 0.0  }
   0xf   :  { %v1516_v1 = vld [vmem:[#allocation4 + $0x168] sm:$0xff]  ;;  %114 = vmatpush.msra.mxu0 %v84_v0  ;;  %v1519_v3 = vld [vmem:[#allocation4 + $0x150] sm:$0xff]  ;;  %v78_v4 = vld [vmem:[#allocation2 + $0x18] sm:$0xff] }
  0x10   :  { %204 = vmatpush.msra.mxu3 %v1516_v1  ;;  %v1521_v5 = vld [vmem:[#allocation4 + $0x138] sm:$0xff]  ;;  %v75_v6 = vld [vmem:[#allocation2] sm:$0xff]  ;;  %v1527_v8 = vld [vmem:[#allocation4 + $0x170] sm:$0xff] }
  0x11   :  { %115 = vmatpush.msra.mxu0 %v81_v2  ;;  %v1524_v7 = vld [vmem:[#allocation4 + $0x120] sm:$0xff]  ;;  %v1529_v9 = vld [vmem:[#allocation4 + $0x108] sm:$0xff]  ;;  %v1532_v10 = vld [vmem:[#allocation4 + $0x158] sm:$0xff] }
  0x12   :  { %205 = vmatpush.msra.mxu3 %v1519_v3  ;;  %v1537_v11 = vld [vmem:[%s2189_s0] sm:$0xff]  ;;  %v1540_v12 = vld [vmem:[#allocation4 + $0xf0] sm:$0xff]  ;;  %v1548_v15 = vld [vmem:[#allocation4 + $0xd8] sm:$0xff] }
  0x13   :  { %116 = vmatpush.msra.mxu0 %v78_v4  ;;  %v1543_v13 = vld [vmem:[#allocation4 + $0x140] sm:$0xff]  ;;  %v85_v14 = vld [vmem:[#allocation2 + $0x50] sm:$0xff]  ;;  %v82_v16 = vld [vmem:[#allocation2 + $0x38] sm:$0xff] }
  0x14   :  { %206 = vmatpush.msra.mxu3 %v1521_v5  ;;  %137 = vmatpush.msra.mxu1 %v85_v14  ;;  %v1551_v17 = vld [vmem:[#allocation4 + $0x128] sm:$0xff]  ;;  %v1554_v18 = vld [vmem:[#allocation4 + $0xc0] sm:$0xff]  ;;  %v1557_v20 = vld [vmem:[#allocation4 + $0x110] sm:$0xff] }
  0x15   :  { %117 = vmatpush.msra.mxu0 %v75_v6  ;;  %v79_v19 = vld [vmem:[#allocation2 + $0x20] sm:$0xff]  ;;  %v76_v21 = vld [vmem:[#allocation2 + $0x8] sm:$0xff]  ;;  %v1568_v24 = vld [vmem:[#allocation4 + $0xf8] sm:$0xff] }
  0x16   :  { %207 = vmatpush.msra.mxu3 %v1524_v7  ;;  %1220 = vmatmul.msk.f32.vlgmr.msra.gmra.mxu0 %vm95_vm0, %v1537_v11  ;;  %v1560_v22 = vld [vmem:[#allocation4 + $0xa8] sm:$0xff]  ;;  %v1570_v25 = vld [vmem:[#allocation4 + $0x178] sm:$0xff]  ;;  %v1573_v26 = vld [vmem:[#allocation4 + $0x90] sm:$0xff] }
  0x17   :  { %224 = vmatpush.msrb.mxu0 %v1527_v8  ;;  %138 = vmatpush.msra.mxu1 %v82_v16  ;;  %v1565_v23 = vld [vmem:[%s2189_s0 + $0x8] sm:$0xff]  ;;  %v1576_v27 = vld [vmem:[#allocation4 + $0xe0] sm:$0xff]  ;;  %v1583_v29 = vld [vmem:[#allocation4 + $0x78] sm:$0xff] }
  0x18   :  { %208 = vmatpush.msra.mxu3 %v1529_v9  ;;  %v1580_v28 = vld [vmem:[#allocation4 + $0x160] sm:$0xff]  ;;  %v86_v30 = vld [vmem:[#allocation2 + $0x58] sm:$0xff]  ;;  %v1587_v31 = vld [vmem:[#allocation4 + $0xc8] sm:$0xff] }
  0x19   :  { %225 = vmatpush.msrb.mxu0 %v1532_v10  ;;  %139 = vmatpush.msra.mxu1 %v79_v19  ;;  %v1591_v32 = vld [vmem:[#allocation4 + $0x148] sm:$0xff]  ;;  %v1594_v33 = vld [vmem:[#allocation4 + $0x60] sm:$0xff]  ;;  %v1596_v34 = vld [vmem:[#allocation4 + $0xb0] sm:$0xff] }
  0x1a   :  { %209 = vmatpush.msra.mxu3 %v1540_v12  ;;  %v83_v35 = vld [vmem:[#allocation2 + $0x40] sm:$0xff]  ;;  %v1600_v36 = vld [vmem:[#allocation4 + $0x130] sm:$0xff]  ;;  %160 = vmatpush.msra.mxu2 %v86_v30  ;;  %v1603_v37 = vld [vmem:[#allocation4 + $0x48] sm:$0xff] }
  0x1b   :  { %226 = vmatpush.msrb.mxu0 %v1543_v13  ;;  %140 = vmatpush.msra.mxu1 %v76_v21  ;;  %v80_v38 = vld [vmem:[#allocation2 + $0x28] sm:$0xff]  ;;  %v1607_v39 = vld [vmem:[#allocation4 + $0x98] sm:$0xff]  ;;  %v1612_v41 = vld [vmem:[#allocation4 + $0x30] sm:$0xff] }
  0x1c   :  { %210 = vmatpush.msra.mxu3 %v1548_v15  ;;  %1222 = vmatmul.msk.f32.vlgmr.msra.gmra.mxu1 %vm95_vm0, %v1537_v11  ;;  %v1609_v40 = vld [vmem:[#allocation4 + $0x118] sm:$0xff]  ;;  %2223 = vst [vmem:[#allocation9_spill] sm:$0xff] %v1612_v41  ;;  %v1616_v42 = vld [vmem:[#allocation4 + $0x80] sm:$0xff]  ;;  %v77_v45 = vld [vmem:[#allocation2 + $0x10] sm:$0xff] }
  0x1d   :  { %227 = vmatpush.msrb.mxu0 %v1551_v17  ;;  %303 = vmatpush.msrb.mxu1 %v1570_v25  ;;  %v1618_v43 = vld [vmem:[#allocation4 + $0x100] sm:$0xff]  ;;  %v1621_v44 = vld [vmem:[#allocation4 + $0x18] sm:$0xff]  ;;  %v1625_v46 = vld [vmem:[#allocation4 + $0x68] sm:$0xff] }
  0x1e   :  { %211 = vmatpush.msra.mxu3 %v1554_v18  ;;  %1221 = vmatmul.msk.f32.gmra.mxu0 %vm95_vm0, %v1565_v23  ;;  %2224 = vst [vmem:[#allocation10_spill] sm:$0xff] %v1621_v44  ;;  %v1627_v47 = vld [vmem:[#allocation4 + $0xe8] sm:$0xff]  ;;  %v1632_v48 = vld [vmem:[#allocation4] sm:$0xff]  ;;  %v1636_v49 = vld [vmem:[#allocation4 + $0x50] sm:$0xff] }
  0x1f   :  { %228 = vmatpush.msrb.mxu0 %v1557_v20  ;;  %304 = vmatpush.msrb.mxu1 %v1580_v28  ;;  %2225 = vst [vmem:[#allocation11_spill] sm:$0xff] %v1632_v48  ;;  %v1640_v50 = vld [vmem:[#allocation4 + $0xd0] sm:$0xff]  ;;  %v1643_v51 = vld [vmem:[#allocation4 + $0x38] sm:$0xff]  ;;  %v1650_v54 = vld [vmem:[#allocation4 + $0x20] sm:$0xff] }
  0x20   :  { %212 = vmatpush.msra.mxu3 %v1560_v22  ;;  %161 = vmatpush.msra.mxu2 %v83_v35  ;;  %2226 = vst [vmem:[#allocation12_spill] sm:$0xff] %v1643_v51  ;;  %v1648_v53 = vld [vmem:[#allocation4 + $0xb8] sm:$0xff]  ;;  %v1655_v55 = vld [vmem:[#allocation4 + $0xa0] sm:$0xff]  ;;  %v1658_v56 = vld [vmem:[#allocation4 + $0x8] sm:$0xff] }
  0x21   :  { %229 = vmatpush.msrb.mxu0 %v1568_v24  ;;  %305 = vmatpush.msrb.mxu1 %v1591_v32  ;;  %2227 = vst [vmem:[#allocation13_spill] sm:$0xff] %v1650_v54  ;;  %v1663_v57 = vld [vmem:[#allocation4 + $0x88] sm:$0xff]  ;;  %v1669_v58 = vld [vmem:[#allocation4 + $0x70] sm:$0xff]  ;;  %v1673_v59 = vld [vmem:[#allocation4 + $0x58] sm:$0xff] }
  0x22   :  { %213 = vmatpush.msra.mxu3 %v1573_v26  ;;  %162 = vmatpush.msra.mxu2 %v80_v38  ;;  %2228 = vst [vmem:[#allocation14_spill] sm:$0xff] %v1658_v56  ;;  %v1679_v60 = vld [vmem:[#allocation4 + $0x40] sm:$0xff]  ;;  %v1685_v61 = vld [vmem:[#allocation4 + $0x28] sm:$0xff]  ;;  %v1691_v62 = vld [vmem:[#allocation4 + $0x10] sm:$0xff] }
  0x23   :  { %230 = vmatpush.msrb.mxu0 %v1576_v27  ;;  %306 = vmatpush.msrb.mxu1 %v1600_v36  ;;  %2229 = vst [vmem:[#allocation15_spill] sm:$0xff] %v1685_v61  ;;  %v1813_v0 = vld [vmem:[%s2192_s3] sm:$0x7] }
  0x24   :  { %214 = vmatpush.msra.mxu3 %v1583_v29  ;;  %1223 = vmatmul.msk.f32.gmra.mxu1 %vm95_vm0, %v1565_v23  ;;  %2230 = vst [vmem:[#allocation16_spill] sm:$0xff] %v1691_v62  ;;  %v89_v2 = vperm.slane %v1813_v0, 0  ;;  %v90_v14 = vperm.slane %v1813_v0, 1 }
  0x25   :  { %231 = vmatpush.msrb.mxu0 %v1587_v31  ;;  %307 = vmatpush.msrb.mxu1 %v1609_v40  ;;  %2231 = vst [vmem:[#allocation17_spill] sm:$0xff] %v1813_v0 }
  0x26   :  { %215 = vmatpush.msra.mxu3 %v1594_v33  ;;  %163 = vmatpush.msra.mxu2 %v77_v45 }
  0x27   :  { %232 = vmatpush.msrb.mxu0 %v1596_v34  ;;  %308 = vmatpush.msrb.mxu1 %v1618_v43 }
  0x28   :  { %216 = vmatpush.msra.mxu3 %v1603_v37  ;;  %1224 = vmatmul.msk.f32.vlgmr.msra.gmra.mxu2 %vm95_vm0, %v1537_v11 }
  0x29   :  { %233 = vmatpush.msrb.mxu0 %v1607_v39  ;;  %309 = vmatpush.msrb.mxu1 %v1627_v47 }
  0x2a   :  { %217 = vmatpush.msra.mxu3 %v1612_v41  ;;  %330 = vmatpush.msrb.mxu2 %v1516_v1 }
  0x2b   :  { %234 = vmatpush.msrb.mxu0 %v1616_v42  ;;  %310 = vmatpush.msrb.mxu1 %v1640_v50 }
  0x2c   :  { %218 = vmatpush.msra.mxu3 %v1621_v44  ;;  %331 = vmatpush.msrb.mxu2 %v1519_v3 }
  0x2d   :  { %235 = vmatpush.msrb.mxu0 %v1625_v46  ;;  %311 = vmatpush.msrb.mxu1 %v1648_v53 }
  0x2e   :  { %219 = vmatpush.msra.mxu3 %v1632_v48  ;;  %332 = vmatpush.msrb.mxu2 %v1521_v5 }
  0x2f   :  { %220 = vmatmul.f32.vlgmr.msra.gmra.mxu3 %v1466_v52  ;;  %236 = vmatpush.msrb.mxu0 %v1636_v49 }
  0x30   :  { %350 = vmatpush.msrb.mxu3 %v1527_v8  ;;  %312 = vmatpush.msrb.mxu1 %v1655_v55 }
  0x31   :  { %237 = vmatpush.msrb.mxu0 %v1643_v51  ;;  %333 = vmatpush.msrb.mxu2 %v1524_v7 }
  0x32   :  { %351 = vmatpush.msrb.mxu3 %v1532_v10  ;;  %313 = vmatpush.msrb.mxu1 %v1663_v57 }
  0x33   :  { %238 = vmatpush.msrb.mxu0 %v1650_v54  ;;  %334 = vmatpush.msrb.mxu2 %v1529_v9 }
  0x34   :  { %352 = vmatpush.msrb.mxu3 %v1543_v13  ;;  %314 = vmatpush.msrb.mxu1 %v1669_v58 }
  0x35   :  { %239 = vmatpush.msrb.mxu0 %v1658_v56  ;;  %335 = vmatpush.msrb.mxu2 %v1540_v12 }
  0x36   :  { %240 = vmatmul.f32.vlgmr.msrb.gmra.mxu0 %v1466_v52  ;;  %353 = vmatpush.msrb.mxu3 %v1551_v17 }
  0x37   :  { %416 = vmatpush.msra.mxu0 %v1570_v25  ;;  %315 = vmatpush.msrb.mxu1 %v1673_v59 }
  0x38   :  { %354 = vmatpush.msrb.mxu3 %v1557_v20  ;;  %336 = vmatpush.msrb.mxu2 %v1548_v15 }
  0x39   :  { %417 = vmatpush.msra.mxu0 %v1580_v28  ;;  %316 = vmatpush.msrb.mxu1 %v1679_v60 }
  0x3a   :  { %355 = vmatpush.msrb.mxu3 %v1568_v24  ;;  %337 = vmatpush.msrb.mxu2 %v1554_v18 }
  0x3b   :  { %418 = vmatpush.msra.mxu0 %v1591_v32  ;;  %317 = vmatpush.msrb.mxu1 %v1685_v61 }
  0x3c   :  { %356 = vmatpush.msrb.mxu3 %v1576_v27  ;;  %338 = vmatpush.msrb.mxu2 %v1560_v22 }
  0x3d   :  { %419 = vmatpush.msra.mxu0 %v1600_v36  ;;  %318 = vmatpush.msrb.mxu1 %v1691_v62 }
  0x3e   :  { %357 = vmatpush.msrb.mxu3 %v1587_v31  ;;  %319 = vmatmul.f32.vlgmr.msrb.gmra.mxu1 %v1466_v52 }
  0x3f   :  { %420 = vmatpush.msra.mxu0 %v1609_v40  ;;  %1225 = vmatmul.msk.f32.gmra.mxu2 %vm95_vm0, %v1565_v23 }
  0x40   :  { %358 = vmatpush.msrb.mxu3 %v1596_v34  ;;  %339 = vmatpush.msrb.mxu2 %v1573_v26 }
  0x41   :  { %421 = vmatpush.msra.mxu0 %v1618_v43  ;;  %452 = vmatpush.msra.mxu1 %v1516_v1 }
  0x42   :  { %359 = vmatpush.msrb.mxu3 %v1607_v39  ;;  %340 = vmatpush.msrb.mxu2 %v1583_v29 }
  0x43   :  { %422 = vmatpush.msra.mxu0 %v1627_v47  ;;  %453 = vmatpush.msra.mxu1 %v1519_v3 }
  0x44   :  { %360 = vmatpush.msrb.mxu3 %v1616_v42  ;;  %341 = vmatpush.msrb.mxu2 %v1594_v33 }
  0x45   :  { %423 = vmatpush.msra.mxu0 %v1640_v50  ;;  %454 = vmatpush.msra.mxu1 %v1521_v5 }
  0x46   :  { %361 = vmatpush.msrb.mxu3 %v1625_v46  ;;  %342 = vmatpush.msrb.mxu2 %v1603_v37 }
  0x47   :  { %424 = vmatpush.msra.mxu0 %v1648_v53  ;;  %455 = vmatpush.msra.mxu1 %v1524_v7 }
  0x48   :  { %362 = vmatpush.msrb.mxu3 %v1636_v49  ;;  %343 = vmatpush.msrb.mxu2 %v1612_v41 }
  0x49   :  { %425 = vmatpush.msra.mxu0 %v1655_v55  ;;  %456 = vmatpush.msra.mxu1 %v1529_v9 }
  0x4a   :  { %363 = vmatpush.msrb.mxu3 %v1643_v51  ;;  %344 = vmatpush.msrb.mxu2 %v1621_v44 }
  0x4b   :  { %426 = vmatpush.msra.mxu0 %v1663_v57  ;;  %457 = vmatpush.msra.mxu1 %v1540_v12 }
  0x4c   :  { %364 = vmatpush.msrb.mxu3 %v1650_v54  ;;  %345 = vmatpush.msrb.mxu2 %v1632_v48 }
  0x4d   :  { %427 = vmatpush.msra.mxu0 %v1669_v58  ;;  %458 = vmatpush.msra.mxu1 %v1548_v15 }
  0x4e   :  { %365 = vmatpush.msrb.mxu3 %v1658_v56  ;;  %472 = vmatpush.msra.mxu2 %v1527_v8 }
  0x4f   :  { %428 = vmatpush.msra.mxu0 %v1673_v59  ;;  %459 = vmatpush.msra.mxu1 %v1554_v18 }
  0x50   :  { %538 = vmatpush.msra.mxu3 %v1570_v25  ;;  %473 = vmatpush.msra.mxu2 %v1532_v10 }
  0x51   :  { %429 = vmatpush.msra.mxu0 %v1679_v60  ;;  %460 = vmatpush.msra.mxu1 %v1560_v22 }
  0x52   :  { %539 = vmatpush.msra.mxu3 %v1580_v28  ;;  %474 = vmatpush.msra.mxu2 %v1543_v13 }
  0x53   :  { %430 = vmatpush.msra.mxu0 %v1685_v61  ;;  %461 = vmatpush.msra.mxu1 %v1573_v26 }
  0x54   :  { %540 = vmatpush.msra.mxu3 %v1591_v32  ;;  %475 = vmatpush.msra.mxu2 %v1551_v17 }
  0x55   :  { %431 = vmatpush.msra.mxu0 %v1691_v62  ;;  %462 = vmatpush.msra.mxu1 %v1583_v29 }
  0x56   :  { %541 = vmatpush.msra.mxu3 %v1600_v36  ;;  %476 = vmatpush.msra.mxu2 %v1557_v20 }
  0x57   :  { %573 = vmatpush.msrb.mxu0 %v1516_v1  ;;  %463 = vmatpush.msra.mxu1 %v1594_v33 }
  0x58   :  { %542 = vmatpush.msra.mxu3 %v1609_v40  ;;  %477 = vmatpush.msra.mxu2 %v1568_v24 }
  0x59   :  { %574 = vmatpush.msrb.mxu0 %v1519_v3  ;;  %464 = vmatpush.msra.mxu1 %v1603_v37 }
  0x5a   :  { %543 = vmatpush.msra.mxu3 %v1618_v43  ;;  %478 = vmatpush.msra.mxu2 %v1576_v27 }
  0x5b   :  { %575 = vmatpush.msrb.mxu0 %v1521_v5  ;;  %465 = vmatpush.msra.mxu1 %v1612_v41 }
  0x5c   :  { %544 = vmatpush.msra.mxu3 %v1627_v47  ;;  %479 = vmatpush.msra.mxu2 %v1587_v31 }
  0x5d   :  { %576 = vmatpush.msrb.mxu0 %v1524_v7  ;;  %466 = vmatpush.msra.mxu1 %v1621_v44 }
  0x5e   :  { %545 = vmatpush.msra.mxu3 %v1640_v50  ;;  %480 = vmatpush.msra.mxu2 %v1596_v34 }
  0x5f   :  { %577 = vmatpush.msrb.mxu0 %v1529_v9  ;;  %467 = vmatpush.msra.mxu1 %v1632_v48 }
  0x60   :  { %546 = vmatpush.msra.mxu3 %v1648_v53  ;;  %481 = vmatpush.msra.mxu2 %v1607_v39 }
  0x61   :  { %578 = vmatpush.msrb.mxu0 %v1540_v12  ;;  %593 = vmatpush.msrb.mxu1 %v1527_v8 }
  0x62   :  { %547 = vmatpush.msra.mxu3 %v1655_v55  ;;  %482 = vmatpush.msra.mxu2 %v1616_v42 }
  0x63   :  { %579 = vmatpush.msrb.mxu0 %v1548_v15  ;;  %594 = vmatpush.msrb.mxu1 %v1532_v10 }
  0x64   :  { %548 = vmatpush.msra.mxu3 %v1663_v57  ;;  %483 = vmatpush.msra.mxu2 %v1625_v46 }
  0x65   :  { %580 = vmatpush.msrb.mxu0 %v1554_v18  ;;  %595 = vmatpush.msrb.mxu1 %v1543_v13 }
  0x66   :  { %549 = vmatpush.msra.mxu3 %v1669_v58  ;;  %484 = vmatpush.msra.mxu2 %v1636_v49 }
  0x67   :  { %581 = vmatpush.msrb.mxu0 %v1560_v22  ;;  %596 = vmatpush.msrb.mxu1 %v1551_v17 }
  0x68   :  { %550 = vmatpush.msra.mxu3 %v1673_v59  ;;  %485 = vmatpush.msra.mxu2 %v1643_v51 }
  0x69   :  { %582 = vmatpush.msrb.mxu0 %v1573_v26  ;;  %597 = vmatpush.msrb.mxu1 %v1557_v20 }
  0x6a   :  { %551 = vmatpush.msra.mxu3 %v1679_v60  ;;  %486 = vmatpush.msra.mxu2 %v1650_v54 }
  0x6b   :  { %583 = vmatpush.msrb.mxu0 %v1583_v29  ;;  %598 = vmatpush.msrb.mxu1 %v1568_v24 }
  0x6c   :  { %552 = vmatpush.msra.mxu3 %v1685_v61  ;;  %487 = vmatpush.msra.mxu2 %v1658_v56 }
  0x6d   :  { %584 = vmatpush.msrb.mxu0 %v1594_v33  ;;  %599 = vmatpush.msrb.mxu1 %v1576_v27 }
  0x6e   :  { %553 = vmatpush.msra.mxu3 %v1691_v62 }
  0x6f   :  { %585 = vmatpush.msrb.mxu0 %v1603_v37  ;;  %600 = vmatpush.msrb.mxu1 %v1587_v31 }
  0x71   :  { %586 = vmatpush.msrb.mxu0 %v1612_v41  ;;  %601 = vmatpush.msrb.mxu1 %v1596_v34 }
  0x73   :  { %587 = vmatpush.msrb.mxu0 %v1621_v44  ;;  %602 = vmatpush.msrb.mxu1 %v1607_v39 }
  0x75   :  { %588 = vmatpush.msrb.mxu0 %v1632_v48  ;;  %603 = vmatpush.msrb.mxu1 %v1616_v42 }
  0x77   :  { %604 = vmatpush.msrb.mxu1 %v1625_v46 }
  0x79   :  { %605 = vmatpush.msrb.mxu1 %v1636_v49 }
  0x7b   :  { %606 = vmatpush.msrb.mxu1 %v1643_v51 }
  0x7d   :  { %607 = vmatpush.msrb.mxu1 %v1650_v54 }
  0x7f   :  { %608 = vmatpush.msrb.mxu1 %v1658_v56 }
  0x93   :  { %v119_v63 = vpop.f32.mrf.mxu0 }
  0x94   :  { %v1823_v23 = vadd.f32 %v119_v63, %v89_v2 }
  0x96   :  { %2235 = vst [vmem:[#allocation21_spill] sm:$0xff] %v1823_v23 }
  0x99   :  { %v142_v11 = vpop.f32.mrf.mxu1 }
  0x9a   :  { %v1821_v21 = vadd.f32 %v142_v11, %v90_v14 }
  0x9b   :  { %v122_v4 = vpop.f32.mrf.mxu0 }
  0x9c   :  { %v1816_v6 = vadd.f32 %v122_v4, %v89_v2  ;;  %2234 = vst [vmem:[#allocation20_spill] sm:$0xff] %v1821_v21 }
  0x9e   :  { %2232 = vst [vmem:[#allocation18_spill] sm:$0xff] %v1816_v6 }
  0xa1   :  { %v145_v16 = vpop.f32.mrf.mxu1 }
  0xa2   :  { %v1819_v19 = vadd.f32 %v145_v16, %v90_v14 }
  0xa4   :  { %2233 = vst [vmem:[#allocation19_spill] sm:$0xff] %v1819_v19 }
  0xab   :  { %v165_v19 = vpop.f32.mrf.mxu2 }
  0xb2   :  { %v221_v30 = vpop.f32.mrf.mxu3 }
  0xb3   :  { %v260_v35 = vadd.f32 %v221_v30, %v1823_v23  ;;  %v241_v38 = vpop.f32.mrf.mxu0  ;;  %v1830_v30 = vld [vmem:[%s2193_s4] ss:$0 sm:$0xff] }
  0xb4   :  { %v261_v45 = vadd.f32 %v241_v38, %v1821_v21  ;;  %2236 = vst [vmem:[#allocation22_spill] sm:$0xff] %v1830_v30 }
  0xb5   :  { %v1226_v52 = vmul.f32 -1.442695, %v260_v35 }
  0xb6   :  { %v1227_v56 = vmul.f32 -1.442695, %v261_v45 }
  0xb7   :  { %1252 = vpow2.f32 %v1226_v52 }
  0xb8   :  { %1254 = vpow2.f32 %v1227_v56 }
  0xbb   :  { %v320_v45 = vpop.f32.mrf.mxu1 }
  0xbc   :  { %v321_v23 = vadd.f32 %v1830_v30, %v320_v45 }
  0xbd   :  { %v1253_v4 = vpop.eup %1252 }
  0xbe   :  { %v1255_v6 = vpop.eup %1254  ;;  %v268_v48 = vadd.f32 1.0, %v1253_v4 }
  0xbf   :  { %v269_v62 = vadd.f32 1.0, %v1255_v6  ;;  %v2217_v6 = vperm.slane %v1813_v0, 2 }
  0xc0   :  { %1256 = vrcp.f32 %v268_v48  ;;  %v281_v38 = vand.u32 2147483648, %v268_v48  ;;  %v279_v52 = vand.u32 2147483647, %v268_v48  ;;  %vm275_vm2 = vweird.f32 %v268_v48 }
  0xc1   :  { %1258 = vrcp.f32 %v269_v62  ;;  %vm290_vm5 = vweird.f32 %v269_v62  ;;  %v296_v51 = vand.u32 2147483648, %v269_v62 }
  0xc2   :  { %vm280_vm4 = vcmp.eq.f32.partialorder %v279_v52, 8.507059e+37 }
  0xc3   :  { %v297_v45 = vor.u32 1.1754944e-38, %v296_v51  ;;  %v2238_v51 = vld [vmem:[#allocation15_spill] sm:$0xff] }
  0xc6   :  { %v1257_v11 = vpop.eup %1256 }
  0xc7   :  { %v1259_v14 = vpop.eup %1258  ;;  %v271_v63 = vmul.f32 %v1257_v11, %v268_v48  ;;  %vm276_vm1 = vweird.f32 %v1257_v11 }
  0xc8   :  { %v286_v2 = vmul.f32 %v1259_v14, %v269_v62  ;;  %vm277_vm3 = vmor %vm275_vm2, %vm276_vm1  ;;  %vm291_vm6 = vweird.f32 %v1259_v14 }
  0xc9   :  { %v272_v16 = vsub.f32 1.0, %v271_v63  ;;  %v282_v63 = vor.u32 1.1754944e-38, %v281_v38  ;;  %vm292_vm7 = vmor %vm290_vm5, %vm291_vm6 }
  0xca   :  { %v287_v35 = vsub.f32 1.0, %v286_v2  ;;  %v1836_v2 = vadd.f32 %v165_v19, %v2217_v6 }
  0xcb   :  { %v273_v56 = vmul.f32 %v1257_v11, %v272_v16 }
  0xcc   :  { %v288_v4 = vmul.f32 %v1259_v14, %v287_v35  ;;  %v294_v35 = vand.u32 2147483647, %v269_v62  ;;  %v2241_v62 = vld [vmem:[#allocation16_spill] sm:$0xff] }
  0xcd   :  { %v274_v21 = vadd.f32 %v1257_v11, %v273_v56 }
  0xce   :  { %v289_v44 = vadd.f32 %v1259_v14, %v288_v4  ;;  %vm295_vm8 = vcmp.eq.f32.partialorder %v294_v35, 8.507059e+37  ;;  %v1892_v4 = vpop.f32.mrf.mxu2 }
  0xcf   :  { %v278_v54 = vsel %vm277_vm3, %v1257_v11, %v274_v21  ;;  %2244 = vst [vmem:[#allocation23_spill] sm:$0xff] %v1892_v4 }
  0xd0   :  { %v283_v16 = vsel %vm280_vm4, %v282_v63, %v278_v54  ;;  %v293_v48 = vsel %vm292_vm7, %v1259_v14, %v289_v44  ;;  %v2237_v44 = vld [vmem:[#allocation12_spill] sm:$0xff]  ;;  %v2239_v54 = vld [vmem:[#allocation10_spill] sm:$0xff] }
  0xd1   :  { %v323_v61 = vmul.f32 %v321_v23, %v283_v16  ;;  %v298_v21 = vsel %vm295_vm8, %v297_v45, %v293_v48  ;;  %v2242_v23 = vld [vmem:[#allocation11_spill] sm:$0xff]  ;;  %v2243_v14 = vld [vmem:[#allocation14_spill] sm:$0xff]  ;;  %v2245_v48 = vld [vmem:[#allocation21_spill] sm:$0xff] }
  0xd2   :  { %v326_v11 = vsub.f32 1.0, %v298_v21  ;;  %v328_v19 = vmul.f32 0.0, %v298_v21  ;;  %v2246_v21 = vld [vmem:[#allocation20_spill] sm:$0xff] }
  0xd3   :  { %v324_v56 = vadd.f32 %v323_v61, %v1836_v2  ;;  %v2240_v61 = vld [vmem:[#allocation13_spill] sm:$0xff] }
  0xd5   :  { %1260 = vtanh.f32 %v324_v56 }
  0xdb   :  { %v1261_v38 = vpop.eup %1260 }
  0xdc   :  { %v327_v52 = vmul.f32 %v1261_v38, %v326_v11 }
  0xde   :  { %v1839_v6 = vadd.f32 %v328_v19, %v327_v52 }
  0xe0   :  { %346 = vmatmul.f32.vlgmr.msrb.gmra.mxu2 %v1839_v6  ;;  %366 = vmatmul.f32.vlgmr.msrb.gmra.mxu3 %v1839_v6 }
  0xe1   :  { %432 = vmatmul.f32.vlgmr.msra.gmra.mxu0 %v1839_v6  ;;  %659 = vmatpush.msrb.mxu2 %v1570_v25 }
  0xe2   :  { %694 = vmatpush.msrb.mxu3 %v1516_v1  ;;  %714 = vmatpush.msra.mxu0 %v1527_v8 }
  0xe3   :  { %660 = vmatpush.msrb.mxu2 %v1580_v28 }
  0xe4   :  { %695 = vmatpush.msrb.mxu3 %v1519_v3  ;;  %715 = vmatpush.msra.mxu0 %v1532_v10 }
  0xe5   :  { %661 = vmatpush.msrb.mxu2 %v1591_v32 }
  0xe6   :  { %696 = vmatpush.msrb.mxu3 %v1521_v5  ;;  %716 = vmatpush.msra.mxu0 %v1543_v13 }
  0xe7   :  { %662 = vmatpush.msrb.mxu2 %v1600_v36 }
  0xe8   :  { %697 = vmatpush.msrb.mxu3 %v1524_v7  ;;  %717 = vmatpush.msra.mxu0 %v1551_v17 }
  0xe9   :  { %663 = vmatpush.msrb.mxu2 %v1609_v40 }
  0xea   :  { %698 = vmatpush.msrb.mxu3 %v1529_v9  ;;  %718 = vmatpush.msra.mxu0 %v1557_v20 }
  0xeb   :  { %664 = vmatpush.msrb.mxu2 %v1618_v43 }
  0xec   :  { %699 = vmatpush.msrb.mxu3 %v1540_v12  ;;  %719 = vmatpush.msra.mxu0 %v1568_v24 }
  0xed   :  { %665 = vmatpush.msrb.mxu2 %v1627_v47 }
  0xee   :  { %700 = vmatpush.msrb.mxu3 %v1548_v15  ;;  %720 = vmatpush.msra.mxu0 %v1576_v27 }
  0xef   :  { %666 = vmatpush.msrb.mxu2 %v1640_v50 }
  0xf0   :  { %701 = vmatpush.msrb.mxu3 %v1554_v18  ;;  %721 = vmatpush.msra.mxu0 %v1587_v31 }
  0xf1   :  { %667 = vmatpush.msrb.mxu2 %v1648_v53 }
  0xf2   :  { %702 = vmatpush.msrb.mxu3 %v1560_v22  ;;  %722 = vmatpush.msra.mxu0 %v1596_v34 }
  0xf3   :  { %668 = vmatpush.msrb.mxu2 %v1655_v55 }
  0xf4   :  { %703 = vmatpush.msrb.mxu3 %v1573_v26  ;;  %723 = vmatpush.msra.mxu0 %v1607_v39 }
  0xf5   :  { %669 = vmatpush.msrb.mxu2 %v1663_v57 }
  0xf6   :  { %704 = vmatpush.msrb.mxu3 %v1583_v29  ;;  %724 = vmatpush.msra.mxu0 %v1616_v42 }
  0xf7   :  { %670 = vmatpush.msrb.mxu2 %v1669_v58 }
  0xf8   :  { %705 = vmatpush.msrb.mxu3 %v1594_v33  ;;  %725 = vmatpush.msra.mxu0 %v1625_v46 }
  0xf9   :  { %671 = vmatpush.msrb.mxu2 %v1673_v59 }
  0xfa   :  { %706 = vmatpush.msrb.mxu3 %v1603_v37  ;;  %726 = vmatpush.msra.mxu0 %v1636_v49 }
  0xfb   :  { %672 = vmatpush.msrb.mxu2 %v1679_v60 }
  0xfc   :  { %707 = vmatpush.msrb.mxu3 %v1612_v41  ;;  %727 = vmatpush.msra.mxu0 %v2237_v44 }
  0xfd   :  { %673 = vmatpush.msrb.mxu2 %v2238_v51 }
  0xfe   :  { %708 = vmatpush.msrb.mxu3 %v2239_v54  ;;  %728 = vmatpush.msra.mxu0 %v2240_v61 }
  0xff   :  { %674 = vmatpush.msrb.mxu2 %v2241_v62 }
 0x100   :  { %709 = vmatpush.msrb.mxu3 %v2242_v23  ;;  %729 = vmatpush.msra.mxu0 %v2243_v14 }
 0x15e   :  { %v433_v54 = vpop.f32.mrf.mxu0 }
 0x163   :  { %v347_v63 = vpop.f32.mrf.mxu2  ;;  %v367_v16 = vpop.f32.mrf.mxu3 }
 0x164   :  { %v372_v35 = vrot.slane %v347_v63, 6  ;;  %v373_v56 = vrot.slane %v367_v16, 6 }
 0x166   :  { %v376_v45 = vadd.f32 %v372_v35, %v2245_v48  ;;  %v377_v11 = vadd.f32 %v373_v56, %v2246_v21  ;;  %v434_v56 = vadd.f32 %v1830_v30, %v433_v54 }
 0x168   :  { %v1228_v38 = vmul.f32 -1.442695, %v376_v45  ;;  %v1229_v52 = vmul.f32 -1.442695, %v377_v11 }
 0x16a   :  { %1262 = vpow2.f32 %v1228_v38 }
 0x16b   :  { %1264 = vpow2.f32 %v1229_v52 }
 0x170   :  { %v1263_v19 = vpop.eup %1262 }
 0x171   :  { %v1265_v0 = vpop.eup %1264  ;;  %v384_v62 = vadd.f32 1.0, %v1263_v19  ;;  %v437_v19 = vrot.slane %v434_v56, 6 }
 0x172   :  { %v385_v23 = vadd.f32 1.0, %v1265_v0 }
 0x173   :  { %1266 = vrcp.f32 %v384_v62  ;;  %v397_v51 = vand.u32 2147483648, %v384_v62  ;;  %v395_v11 = vand.u32 2147483647, %v384_v62  ;;  %vm391_vm10 = vweird.f32 %v384_v62 }
 0x174   :  { %1268 = vrcp.f32 %v385_v23  ;;  %v412_v41 = vand.u32 2147483648, %v385_v23  ;;  %vm406_vm14 = vweird.f32 %v385_v23 }
 0x175   :  { %v398_v0 = vor.u32 1.1754944e-38, %v397_v51  ;;  %vm396_vm12 = vcmp.eq.f32.partialorder %v395_v11, 8.507059e+37  ;;  %v445_v51 = vrot.slane %v1839_v6, 6 }
 0x176   :  { %v413_v30 = vor.u32 1.1754944e-38, %v412_v41 }
 0x179   :  { %v1267_v14 = vpop.eup %1266 }
 0x17a   :  { %v1269_v4 = vpop.eup %1268  ;;  %v387_v61 = vmul.f32 %v1267_v14, %v384_v62  ;;  %vm392_vm9 = vweird.f32 %v1267_v14 }
 0x17b   :  { %v402_v63 = vmul.f32 %v1269_v4, %v385_v23  ;;  %vm393_vm11 = vmor %vm391_vm10, %vm392_vm9  ;;  %vm407_vm13 = vweird.f32 %v1269_v4 }
 0x17c   :  { %v388_v16 = vsub.f32 1.0, %v387_v61  ;;  %vm408_vm15 = vmor %vm406_vm14, %vm407_vm13 }
 0x17d   :  { %v403_v35 = vsub.f32 1.0, %v402_v63  ;;  %v410_v63 = vand.u32 2147483647, %v385_v23 }
 0x17e   :  { %v389_v45 = vmul.f32 %v1267_v14, %v388_v16 }
 0x17f   :  { %v404_v38 = vmul.f32 %v1269_v4, %v403_v35  ;;  %vm411_vm0 = vcmp.eq.f32.partialorder %v410_v63, 8.507059e+37 }
 0x180   :  { %v390_v52 = vadd.f32 %v1267_v14, %v389_v45 }
 0x181   :  { %v405_v44 = vadd.f32 %v1269_v4, %v404_v38  ;;  %v2257_v38 = vld [vmem:[#allocation22_spill] sm:$0xff] }
 0x182   :  { %v394_v21 = vsel %vm393_vm11, %v1267_v14, %v390_v52 }
 0x183   :  { %v399_v48 = vsel %vm396_vm12, %v398_v0, %v394_v21  ;;  %v409_v16 = vsel %vm408_vm15, %v1269_v4, %v405_v44 }
 0x184   :  { %v439_v61 = vmul.f32 %v437_v19, %v399_v48  ;;  %v414_v62 = vsel %vm411_vm0, %v413_v30, %v409_v16 }
 0x185   :  { %v442_v35 = vsub.f32 1.0, %v414_v62  ;;  %v447_v21 = vmul.f32 %v445_v51, %v414_v62 }
 0x186   :  { %v440_v54 = vadd.f32 %v439_v61, %v1836_v2 }
 0x188   :  { %1270 = vtanh.f32 %v440_v54 }
 0x18e   :  { %v1271_v14 = vpop.eup %1270 }
 0x18f   :  { %v443_v56 = vmul.f32 %v1271_v14, %v442_v35 }
 0x191   :  { %v1899_v45 = vadd.f32 %v447_v21, %v443_v56 }
 0x193   :  { %v450_v48 = vrot.slane %v1899_v45, 2 }
 0x195   :  { %468 = vmatmul.f32.vlgmr.msra.gmra.mxu1 %v450_v48  ;;  %488 = vmatmul.f32.vlgmr.msra.gmra.mxu2 %v450_v48 }
 0x196   :  { %554 = vmatmul.f32.vlgmr.msra.gmra.mxu3 %v450_v48  ;;  %774 = vmatpush.msra.mxu1 %v1570_v25 }
 0x197   :  { %801 = vmatpush.msra.mxu2 %v1516_v1  ;;  %821 = vmatpush.msra.mxu3 %v1527_v8  ;;  %v2247_v1 = vld [vmem:[#allocation9_spill] sm:$0xff] }
 0x198   :  { %775 = vmatpush.msra.mxu1 %v1580_v28  ;;  %v2251_v8 = vld [vmem:[#allocation13_spill] sm:$0xff] }
 0x199   :  { %802 = vmatpush.msra.mxu2 %v1519_v3  ;;  %822 = vmatpush.msra.mxu3 %v1532_v10  ;;  %v2248_v3 = vld [vmem:[#allocation12_spill] sm:$0xff]  ;;  %v2253_v10 = vld [vmem:[#allocation11_spill] sm:$0xff] }
 0x19a   :  { %776 = vmatpush.msra.mxu1 %v1591_v32 }
 0x19b   :  { %803 = vmatpush.msra.mxu2 %v1521_v5  ;;  %823 = vmatpush.msra.mxu3 %v1543_v13  ;;  %v2249_v5 = vld [vmem:[#allocation15_spill] sm:$0xff] }
 0x19c   :  { %777 = vmatpush.msra.mxu1 %v1600_v36 }
 0x19d   :  { %804 = vmatpush.msra.mxu2 %v1524_v7  ;;  %824 = vmatpush.msra.mxu3 %v1551_v17  ;;  %v2250_v7 = vld [vmem:[#allocation10_spill] sm:$0xff]  ;;  %v2255_v17 = vld [vmem:[#allocation21_spill] sm:$0xff] }
 0x19e   :  { %778 = vmatpush.msra.mxu1 %v1609_v40 }
 0x19f   :  { %805 = vmatpush.msra.mxu2 %v1529_v9  ;;  %825 = vmatpush.msra.mxu3 %v1557_v20  ;;  %v2252_v9 = vld [vmem:[#allocation16_spill] sm:$0xff] }
 0x1a0   :  { %779 = vmatpush.msra.mxu1 %v1618_v43 }
 0x1a1   :  { %806 = vmatpush.msra.mxu2 %v1540_v12  ;;  %826 = vmatpush.msra.mxu3 %v1568_v24  ;;  %v2254_v12 = vld [vmem:[#allocation14_spill] sm:$0xff] }
 0x1a2   :  { %780 = vmatpush.msra.mxu1 %v1627_v47 }
 0x1a3   :  { %807 = vmatpush.msra.mxu2 %v1548_v15  ;;  %827 = vmatpush.msra.mxu3 %v1576_v27 }
 0x1a4   :  { %781 = vmatpush.msra.mxu1 %v1640_v50 }
 0x1a5   :  { %808 = vmatpush.msra.mxu2 %v1554_v18  ;;  %828 = vmatpush.msra.mxu3 %v1587_v31 }
 0x1a6   :  { %782 = vmatpush.msra.mxu1 %v1648_v53 }
 0x1a7   :  { %809 = vmatpush.msra.mxu2 %v1560_v22  ;;  %829 = vmatpush.msra.mxu3 %v1596_v34 }
 0x1a8   :  { %783 = vmatpush.msra.mxu1 %v1655_v55 }
 0x1a9   :  { %810 = vmatpush.msra.mxu2 %v1573_v26  ;;  %830 = vmatpush.msra.mxu3 %v1607_v39  ;;  %v2256_v26 = vld [vmem:[#allocation20_spill] sm:$0xff] }
 0x1aa   :  { %784 = vmatpush.msra.mxu1 %v1663_v57 }
 0x1ab   :  { %811 = vmatpush.msra.mxu2 %v1583_v29  ;;  %831 = vmatpush.msra.mxu3 %v1616_v42 }
 0x1ac   :  { %785 = vmatpush.msra.mxu1 %v1669_v58 }
 0x1ad   :  { %812 = vmatpush.msra.mxu2 %v1594_v33  ;;  %832 = vmatpush.msra.mxu3 %v1625_v46 }
 0x1ae   :  { %786 = vmatpush.msra.mxu1 %v1673_v59 }
 0x1af   :  { %813 = vmatpush.msra.mxu2 %v1603_v37  ;;  %833 = vmatpush.msra.mxu3 %v1636_v49 }
 0x1b0   :  { %787 = vmatpush.msra.mxu1 %v1679_v60 }
 0x1b1   :  { %814 = vmatpush.msra.mxu2 %v2247_v1  ;;  %834 = vmatpush.msra.mxu3 %v2248_v3 }
 0x1b2   :  { %788 = vmatpush.msra.mxu1 %v2249_v5 }
 0x1b3   :  { %815 = vmatpush.msra.mxu2 %v2250_v7  ;;  %835 = vmatpush.msra.mxu3 %v2251_v8 }
 0x1b4   :  { %789 = vmatpush.msra.mxu1 %v2252_v9 }
 0x1b5   :  { %816 = vmatpush.msra.mxu2 %v2253_v10  ;;  %836 = vmatpush.msra.mxu3 %v2254_v12 }
 0x212   :  { %v469_v13 = vpop.f32.mrf.mxu1 }
 0x213   :  { %v494_v15 = vrot.slane %v469_v13, 4 }
 0x215   :  { %v498_v18 = vadd.f32 %v494_v15, %v2255_v17 }
 0x217   :  { %v1230_v20 = vmul.f32 -1.442695, %v498_v18 }
 0x218   :  { %v489_v22 = vpop.f32.mrf.mxu2 }
 0x219   :  { %1272 = vpow2.f32 %v1230_v20  ;;  %v495_v24 = vrot.slane %v489_v22, 4  ;;  %v555_v6 = vpop.f32.mrf.mxu3  ;;  %v566_v22 = vrot.slane %v1899_v45, 6  ;;  %v1966_v45 = vld [vmem:[#allocation4 + $0x150] sm:$0xff] }
 0x21a   :  { %v556_v52 = vadd.f32 %v2257_v38, %v555_v6  ;;  %v1976_v6 = vld [vmem:[#allocation4 + $0x140] sm:$0xff] }
 0x21b   :  { %v499_v27 = vadd.f32 %v495_v24, %v2256_v26 }
 0x21c   :  { %v559_v62 = vrot.slane %v556_v52, 4  ;;  %v2011_v52 = vld [vmem:[#allocation4 + $0xc8] sm:$0xff] }
 0x21d   :  { %v1231_v29 = vmul.f32 -1.442695, %v499_v27 }
 0x21f   :  { %v1273_v31 = vpop.eup %1272  ;;  %1274 = vpow2.f32 %v1231_v29 }
 0x220   :  { %v506_v33 = vadd.f32 1.0, %v1273_v31 }
 0x222   :  { %1276 = vrcp.f32 %v506_v33  ;;  %v519_v23 = vand.u32 2147483648, %v506_v33  ;;  %v517_v11 = vand.u32 2147483647, %v506_v33  ;;  %vm513_vm2 = vweird.f32 %v506_v33 }
 0x224   :  { %v520_v63 = vor.u32 1.1754944e-38, %v519_v23  ;;  %vm518_vm4 = vcmp.eq.f32.partialorder %v517_v11, 8.507059e+37  ;;  %v1990_v23 = vld [vmem:[#allocation4 + $0x110] sm:$0xff]  ;;  %v2004_v11 = vld [vmem:[#allocation4 + $0xe0] sm:$0xff] }
 0x225   :  { %v1275_v34 = vpop.eup %1274 }
 0x226   :  { %v507_v37 = vadd.f32 1.0, %v1275_v34 }
 0x228   :  { %v1277_v41 = vpop.eup %1276  ;;  %1278 = vrcp.f32 %v507_v37  ;;  %v534_v56 = vand.u32 2147483648, %v507_v37  ;;  %v532_v21 = vand.u32 2147483647, %v507_v37  ;;  %vm528_vm6 = vweird.f32 %v507_v37 }
 0x229   :  { %v509_v30 = vmul.f32 %v1277_v41, %v506_v33  ;;  %vm514_vm1 = vweird.f32 %v1277_v41 }
 0x22a   :  { %vm515_vm3 = vmor %vm513_vm2, %vm514_vm1  ;;  %v535_v18 = vor.u32 1.1754944e-38, %v534_v56  ;;  %vm533_vm8 = vcmp.eq.f32.partialorder %v532_v21, 8.507059e+37 }
 0x22b   :  { %v510_v44 = vsub.f32 1.0, %v509_v30  ;;  %v1969_v30 = vld [vmem:[#allocation4 + $0x158] sm:$0xff] }
 0x22d   :  { %v511_v4 = vmul.f32 %v1277_v41, %v510_v44  ;;  %v1983_v44 = vld [vmem:[#allocation4 + $0x128] sm:$0xff] }
 0x22e   :  { %v1279_v0 = vpop.eup %1278 }
 0x22f   :  { %v524_v19 = vmul.f32 %v1279_v0, %v507_v37  ;;  %v512_v61 = vadd.f32 %v1277_v41, %v511_v4  ;;  %vm529_vm5 = vweird.f32 %v1279_v0  ;;  %v1959_v37 = vld [vmem:[#allocation4 + $0x168] sm:$0xff]  ;;  %v1997_v4 = vld [vmem:[#allocation4 + $0xf8] sm:$0xff] }
 0x230   :  { %vm530_vm7 = vmor %vm528_vm6, %vm529_vm5 }
 0x231   :  { %v525_v54 = vsub.f32 1.0, %v524_v19  ;;  %v516_v16 = vsel %vm515_vm3, %v1277_v41, %v512_v61  ;;  %v1962_v41 = vld [vmem:[#allocation4 + $0x170] sm:$0xff]  ;;  %v2027_v19 = vld [vmem:[#allocation4 + $0x78] sm:$0xff] }
 0x232   :  { %v521_v35 = vsel %vm518_vm4, %v520_v63, %v516_v16 }
 0x233   :  { %v526_v51 = vmul.f32 %v1279_v0, %v525_v54  ;;  %v561_v14 = vmul.f32 %v559_v62, %v521_v35 }
 0x235   :  { %v562_v48 = vadd.f32 %v561_v14, %v1836_v2  ;;  %v527_v13 = vadd.f32 %v1279_v0, %v526_v51 }
 0x237   :  { %1280 = vtanh.f32 %v562_v48  ;;  %v531_v15 = vsel %vm530_vm7, %v1279_v0, %v527_v13  ;;  %v2018_v0 = vld [vmem:[#allocation4 + $0xb0] sm:$0xff] }
 0x238   :  { %v536_v20 = vsel %vm533_vm8, %v535_v18, %v531_v15 }
 0x239   :  { %v564_v24 = vsub.f32 1.0, %v536_v20  ;;  %v568_v31 = vmul.f32 %v566_v22, %v536_v20 }
 0x23d   :  { %v1281_v27 = vpop.eup %1280 }
 0x23e   :  { %v565_v29 = vmul.f32 %v1281_v27, %v564_v24 }
 0x240   :  { %v1955_v33 = vadd.f32 %v568_v31, %v565_v29 }
 0x242   :  { %v571_v34 = vrot.slane %v1955_v33, 4  ;;  %v687_v31 = vrot.slane %v1955_v33, 6  ;;  %v2065_v33 = vld [vmem:[#allocation4 + $0x160] sm:$0xff] }
 0x244   :  { %589 = vmatmul.f32.vlgmr.msrb.gmra.mxu0 %v571_v34  ;;  %609 = vmatmul.f32.vlgmr.msrb.gmra.mxu1 %v571_v34 }
 0x245   :  { %675 = vmatmul.f32.vlgmr.msrb.gmra.mxu2 %v571_v34  ;;  %887 = vmatpush.msrb.mxu0 %v1570_v25  ;;  %v1973_v25 = vld [vmem:[#allocation4 + $0x138] sm:$0xff] }
 0x246   :  { %923 = vmatpush.msrb.mxu1 %v1959_v37  ;;  %943 = vmatpush.msrb.mxu2 %v1962_v41 }
 0x247   :  { %888 = vmatpush.msrb.mxu0 %v1580_v28  ;;  %v1980_v28 = vld [vmem:[#allocation4 + $0x120] sm:$0xff] }
 0x248   :  { %924 = vmatpush.msrb.mxu1 %v1966_v45  ;;  %944 = vmatpush.msrb.mxu2 %v1969_v30 }
 0x249   :  { %889 = vmatpush.msrb.mxu0 %v1591_v32  ;;  %v1987_v32 = vld [vmem:[#allocation4 + $0x108] sm:$0xff] }
 0x24a   :  { %925 = vmatpush.msrb.mxu1 %v1973_v25  ;;  %945 = vmatpush.msrb.mxu2 %v1976_v6 }
 0x24b   :  { %890 = vmatpush.msrb.mxu0 %v1600_v36  ;;  %v1994_v36 = vld [vmem:[#allocation4 + $0xf0] sm:$0xff] }
 0x24c   :  { %926 = vmatpush.msrb.mxu1 %v1980_v28  ;;  %946 = vmatpush.msrb.mxu2 %v1983_v44 }
 0x24d   :  { %891 = vmatpush.msrb.mxu0 %v1609_v40  ;;  %v2001_v40 = vld [vmem:[#allocation4 + $0xd8] sm:$0xff] }
 0x24e   :  { %927 = vmatpush.msrb.mxu1 %v1987_v32  ;;  %947 = vmatpush.msrb.mxu2 %v1990_v23 }
 0x24f   :  { %892 = vmatpush.msrb.mxu0 %v1618_v43  ;;  %v2008_v43 = vld [vmem:[#allocation4 + $0xc0] sm:$0xff] }
 0x250   :  { %928 = vmatpush.msrb.mxu1 %v1994_v36  ;;  %948 = vmatpush.msrb.mxu2 %v1997_v4 }
 0x251   :  { %893 = vmatpush.msrb.mxu0 %v1627_v47  ;;  %v2015_v47 = vld [vmem:[#allocation4 + $0xa8] sm:$0xff] }
 0x252   :  { %929 = vmatpush.msrb.mxu1 %v2001_v40  ;;  %949 = vmatpush.msrb.mxu2 %v2004_v11 }
 0x253   :  { %894 = vmatpush.msrb.mxu0 %v1640_v50  ;;  %v2022_v50 = vld [vmem:[#allocation4 + $0x90] sm:$0xff] }
 0x254   :  { %930 = vmatpush.msrb.mxu1 %v2008_v43  ;;  %950 = vmatpush.msrb.mxu2 %v2011_v52 }
 0x255   :  { %895 = vmatpush.msrb.mxu0 %v1648_v53  ;;  %v2032_v53 = vld [vmem:[#allocation4 + $0x60] sm:$0xff] }
 0x256   :  { %931 = vmatpush.msrb.mxu1 %v2015_v47  ;;  %951 = vmatpush.msrb.mxu2 %v2018_v0 }
 0x257   :  { %896 = vmatpush.msrb.mxu0 %v1655_v55  ;;  %v2037_v55 = vld [vmem:[#allocation4 + $0x48] sm:$0xff] }
 0x258   :  { %932 = vmatpush.msrb.mxu1 %v2022_v50  ;;  %952 = vmatpush.msrb.mxu2 %v1607_v39 }
 0x259   :  { %897 = vmatpush.msrb.mxu0 %v1663_v57 }
 0x25a   :  { %933 = vmatpush.msrb.mxu1 %v2027_v19  ;;  %953 = vmatpush.msrb.mxu2 %v1616_v42 }
 0x25b   :  { %898 = vmatpush.msrb.mxu0 %v1669_v58 }
 0x25c   :  { %934 = vmatpush.msrb.mxu1 %v2032_v53  ;;  %954 = vmatpush.msrb.mxu2 %v1625_v46 }
 0x25d   :  { %899 = vmatpush.msrb.mxu0 %v1673_v59 }
 0x25e   :  { %935 = vmatpush.msrb.mxu1 %v2037_v55  ;;  %955 = vmatpush.msrb.mxu2 %v1636_v49 }
 0x25f   :  { %900 = vmatpush.msrb.mxu0 %v1679_v60 }
 0x260   :  { %936 = vmatpush.msrb.mxu1 %v2247_v1  ;;  %956 = vmatpush.msrb.mxu2 %v2248_v3 }
 0x261   :  { %901 = vmatpush.msrb.mxu0 %v2249_v5 }
 0x262   :  { %937 = vmatpush.msrb.mxu1 %v2250_v7  ;;  %957 = vmatpush.msrb.mxu2 %v2251_v8 }
 0x263   :  { %902 = vmatpush.msrb.mxu0 %v2252_v9 }
 0x264   :  { %938 = vmatpush.msrb.mxu1 %v2253_v10  ;;  %958 = vmatpush.msrb.mxu2 %v2254_v12 }
 0x2c1   :  { %v590_v39 = vpop.f32.mrf.mxu0  ;;  %v610_v42 = vpop.f32.mrf.mxu1 }
 0x2c2   :  { %v615_v46 = vrot.slane %v590_v39, 2  ;;  %v616_v49 = vrot.slane %v610_v42, 2 }
 0x2c4   :  { %v619_v57 = vadd.f32 %v615_v46, %v2255_v17  ;;  %v620_v58 = vadd.f32 %v616_v49, %v2256_v26 }
 0x2c6   :  { %v1232_v59 = vmul.f32 -1.442695, %v619_v57  ;;  %v1233_v60 = vmul.f32 -1.442695, %v620_v58  ;;  %v2070_v58 = vld [vmem:[#allocation4 + $0x148] sm:$0xff] }
 0x2c8   :  { %1282 = vpow2.f32 %v1232_v59  ;;  %v676_v61 = vpop.f32.mrf.mxu2  ;;  %v2075_v59 = vld [vmem:[#allocation4 + $0x130] sm:$0xff] }
 0x2c9   :  { %1284 = vpow2.f32 %v1233_v60  ;;  %v677_v62 = vadd.f32 %v2257_v38, %v676_v61 }
 0x2cb   :  { %v680_v21 = vrot.slane %v677_v62, 2 }
 0x2ce   :  { %v1283_v1 = vpop.eup %1282 }
 0x2cf   :  { %v1285_v3 = vpop.eup %1284  ;;  %v627_v5 = vadd.f32 1.0, %v1283_v1  ;;  %v2258_v1 = vld [vmem:[#allocation19_spill] sm:$0xff] }
 0x2d0   :  { %v628_v7 = vadd.f32 1.0, %v1285_v3 }
 0x2d1   :  { %1286 = vrcp.f32 %v627_v5  ;;  %v640_v17 = vand.u32 2147483648, %v627_v5  ;;  %v638_v26 = vand.u32 2147483647, %v627_v5  ;;  %vm634_vm10 = vweird.f32 %v627_v5 }
 0x2d2   :  { %1288 = vrcp.f32 %v628_v7  ;;  %v655_v18 = vand.u32 2147483648, %v628_v7  ;;  %vm649_vm14 = vweird.f32 %v628_v7  ;;  %v653_v20 = vand.u32 2147483647, %v628_v7 }
 0x2d3   :  { %v641_v14 = vor.u32 1.1754944e-38, %v640_v17  ;;  %vm639_vm12 = vcmp.eq.f32.partialorder %v638_v26, 8.507059e+37 }
 0x2d4   :  { %v656_v27 = vor.u32 1.1754944e-38, %v655_v18  ;;  %vm654_vm0 = vcmp.eq.f32.partialorder %v653_v20, 8.507059e+37 }
 0x2d7   :  { %v1287_v8 = vpop.eup %1286 }
 0x2d8   :  { %v1289_v9 = vpop.eup %1288  ;;  %v630_v10 = vmul.f32 %v1287_v8, %v627_v5  ;;  %vm635_vm9 = vweird.f32 %v1287_v8 }
 0x2d9   :  { %v645_v12 = vmul.f32 %v1289_v9, %v628_v7  ;;  %vm636_vm11 = vmor %vm634_vm10, %vm635_vm9  ;;  %vm650_vm13 = vweird.f32 %v1289_v9 }
 0x2da   :  { %v631_v63 = vsub.f32 1.0, %v630_v10  ;;  %vm651_vm15 = vmor %vm649_vm14, %vm650_vm13 }
 0x2db   :  { %v646_v54 = vsub.f32 1.0, %v645_v12 }
 0x2dc   :  { %v632_v16 = vmul.f32 %v1287_v8, %v631_v63 }
 0x2dd   :  { %v647_v35 = vmul.f32 %v1289_v9, %v646_v54 }
 0x2de   :  { %v633_v51 = vadd.f32 %v1287_v8, %v632_v16 }
 0x2df   :  { %v648_v13 = vadd.f32 %v1289_v9, %v647_v35 }
 0x2e0   :  { %v637_v56 = vsel %vm636_vm11, %v1287_v8, %v633_v51  ;;  %v2259_v8 = vld [vmem:[#allocation18_spill] sm:$0xff] }
 0x2e1   :  { %v642_v48 = vsel %vm639_vm12, %v641_v14, %v637_v56  ;;  %v652_v24 = vsel %vm651_vm15, %v1289_v9, %v648_v13 }
 0x2e2   :  { %v682_v15 = vmul.f32 %v680_v21, %v642_v48  ;;  %v657_v29 = vsel %vm654_vm0, %v656_v27, %v652_v24 }
 0x2e3   :  { %v685_v34 = vsub.f32 1.0, %v657_v29  ;;  %v689_v46 = vmul.f32 %v687_v31, %v657_v29  ;;  %v2260_v29 = vld [vmem:[#allocation17_spill] sm:$0xff] }
 0x2e4   :  { %v683_v22 = vadd.f32 %v682_v15, %v1836_v2  ;;  %v2060_v2 = vld [vmem:[#allocation4 + $0x178] sm:$0xff]  ;;  %v2261_v31 = vperm.slane %v2260_v29, 2 }
 0x2e6   :  { %1290 = vtanh.f32 %v683_v22 }
 0x2ec   :  { %v1291_v39 = vpop.eup %1290 }
 0x2ed   :  { %v686_v42 = vmul.f32 %v1291_v39, %v685_v34  ;;  %v2262_v34 = vld [vmem:[#allocation23_spill] sm:$0xff] }
 0x2ee   :  { %v2136_v39 = vadd.f32 %v2262_v34, %v2261_v31 }
 0x2ef   :  { %v690_v49 = vadd.f32 %v689_v46, %v686_v42 }
 0x2f1   :  { %v2055_v57 = vrot.slane %v690_v49, 6 }
 0x2f3   :  { %710 = vmatmul.f32.vlgmr.msrb.gmra.mxu3 %v2055_v57  ;;  %730 = vmatmul.f32.vlgmr.msra.gmra.mxu0 %v2055_v57 }
 0x2f4   :  { %790 = vmatmul.f32.vlgmr.msra.gmra.mxu1 %v2055_v57  ;;  %1009 = vmatpush.msrb.mxu3 %v2060_v2 }
 0x2f5   :  { %1044 = vmatpush.msra.mxu0 %v1959_v37  ;;  %1064 = vmatpush.msra.mxu1 %v1962_v41  ;;  %v2080_v37 = vld [vmem:[#allocation4 + $0x118] sm:$0xff]  ;;  %v2085_v41 = vld [vmem:[#allocation4 + $0x100] sm:$0xff] }
 0x2f6   :  { %1010 = vmatpush.msrb.mxu3 %v2065_v33 }
 0x2f7   :  { %1045 = vmatpush.msra.mxu0 %v1966_v45  ;;  %1065 = vmatpush.msra.mxu1 %v1969_v30  ;;  %v2090_v45 = vld [vmem:[#allocation4 + $0xe8] sm:$0xff]  ;;  %v2095_v30 = vld [vmem:[#allocation4 + $0xd0] sm:$0xff] }
 0x2f8   :  { %1011 = vmatpush.msrb.mxu3 %v2070_v58 }
 0x2f9   :  { %1046 = vmatpush.msra.mxu0 %v1973_v25  ;;  %1066 = vmatpush.msra.mxu1 %v1976_v6  ;;  %v2100_v25 = vld [vmem:[#allocation4 + $0xb8] sm:$0xff]  ;;  %v2105_v6 = vld [vmem:[#allocation4 + $0xa0] sm:$0xff] }
 0x2fa   :  { %1012 = vmatpush.msrb.mxu3 %v2075_v59 }
 0x2fb   :  { %1047 = vmatpush.msra.mxu0 %v1980_v28  ;;  %1067 = vmatpush.msra.mxu1 %v1983_v44  ;;  %v1366_v28 = vld [vmem:[#allocation4 + $0x98] sm:$0xff]  ;;  %v2109_v44 = vld [vmem:[#allocation4 + $0x88] sm:$0xff] }
 0x2fc   :  { %1013 = vmatpush.msrb.mxu3 %v2080_v37 }
 0x2fd   :  { %1048 = vmatpush.msra.mxu0 %v1987_v32  ;;  %1068 = vmatpush.msra.mxu1 %v1990_v23  ;;  %v1368_v32 = vld [vmem:[#allocation4 + $0x80] sm:$0xff]  ;;  %v2113_v23 = vld [vmem:[#allocation4 + $0x70] sm:$0xff] }
 0x2fe   :  { %1014 = vmatpush.msrb.mxu3 %v2085_v41 }
 0x2ff   :  { %1049 = vmatpush.msra.mxu0 %v1994_v36  ;;  %1069 = vmatpush.msra.mxu1 %v1997_v4  ;;  %v1370_v36 = vld [vmem:[#allocation4 + $0x68] sm:$0xff]  ;;  %v2117_v4 = vld [vmem:[#allocation4 + $0x58] sm:$0xff] }
 0x300   :  { %1015 = vmatpush.msrb.mxu3 %v2090_v45 }
 0x301   :  { %1050 = vmatpush.msra.mxu0 %v2001_v40  ;;  %1070 = vmatpush.msra.mxu1 %v2004_v11  ;;  %v1372_v40 = vld [vmem:[#allocation4 + $0x50] sm:$0xff]  ;;  %v2121_v11 = vld [vmem:[#allocation4 + $0x40] sm:$0xff] }
 0x302   :  { %1016 = vmatpush.msrb.mxu3 %v2095_v30 }
 0x303   :  { %1051 = vmatpush.msra.mxu0 %v2008_v43  ;;  %1071 = vmatpush.msra.mxu1 %v2011_v52  ;;  %v1374_v43 = vld [vmem:[#allocation4 + $0x30] sm:$0xff]  ;;  %v1375_v52 = vld [vmem:[#allocation4 + $0x38] sm:$0xff] }
 0x304   :  { %1017 = vmatpush.msrb.mxu3 %v2100_v25 }
 0x305   :  { %1052 = vmatpush.msra.mxu0 %v2015_v47  ;;  %1072 = vmatpush.msra.mxu1 %v2018_v0  ;;  %v2124_v47 = vld [vmem:[#allocation4 + $0x28] sm:$0xff]  ;;  %v1377_v0 = vld [vmem:[#allocation4 + $0x18] sm:$0xff] }
 0x306   :  { %1018 = vmatpush.msrb.mxu3 %v2105_v6 }
 0x307   :  { %1053 = vmatpush.msra.mxu0 %v2022_v50  ;;  %1073 = vmatpush.msra.mxu1 %v1366_v28  ;;  %v1378_v50 = vld [vmem:[#allocation4 + $0x20] sm:$0xff] }
 0x308   :  { %1019 = vmatpush.msrb.mxu3 %v2109_v44 }
 0x309   :  { %1054 = vmatpush.msra.mxu0 %v2027_v19  ;;  %1074 = vmatpush.msra.mxu1 %v1368_v32  ;;  %v2127_v19 = vld [vmem:[#allocation4 + $0x10] sm:$0xff] }
 0x30a   :  { %1020 = vmatpush.msrb.mxu3 %v2113_v23 }
 0x30b   :  { %1055 = vmatpush.msra.mxu0 %v2032_v53  ;;  %1075 = vmatpush.msra.mxu1 %v1370_v36  ;;  %v1380_v53 = vld [vmem:[#allocation4] sm:$0xff] }
 0x30c   :  { %1021 = vmatpush.msrb.mxu3 %v2117_v4 }
 0x30d   :  { %1056 = vmatpush.msra.mxu0 %v2037_v55  ;;  %1076 = vmatpush.msra.mxu1 %v1372_v40  ;;  %v1381_v55 = vld [vmem:[#allocation4 + $0x8] sm:$0xff] }
 0x30e   :  { %1022 = vmatpush.msrb.mxu3 %v2121_v11 }
 0x30f   :  { %1057 = vmatpush.msra.mxu0 %v1374_v43  ;;  %1077 = vmatpush.msra.mxu1 %v1375_v52 }
 0x310   :  { %1023 = vmatpush.msrb.mxu3 %v2124_v47 }
 0x311   :  { %1058 = vmatpush.msra.mxu0 %v1377_v0  ;;  %1078 = vmatpush.msra.mxu1 %v1378_v50 }
 0x312   :  { %1024 = vmatpush.msrb.mxu3 %v2127_v19 }
 0x313   :  { %1059 = vmatpush.msra.mxu0 %v1380_v53  ;;  %1079 = vmatpush.msra.mxu1 %v1381_v55 }
 0x370   :  { %v731_v60 = vpop.f32.mrf.mxu0 }
 0x371   :  { %v735_v3 = vadd.f32 %v731_v60, %v2258_v1  ;;  %v791_v13 = vpop.f32.mrf.mxu1 }
 0x372   :  { %v792_v20 = vadd.f32 %v2257_v38, %v791_v13 }
 0x373   :  { %v1235_v5 = vmul.f32 -1.442695, %v735_v3 }
 0x375   :  { %1292 = vpow2.f32 %v1235_v5 }
 0x376   :  { %v711_v7 = vpop.f32.mrf.mxu3 }
 0x377   :  { %v734_v9 = vadd.f32 %v711_v7, %v2259_v8 }
 0x379   :  { %v1234_v10 = vmul.f32 -1.442695, %v734_v9 }
 0x37b   :  { %v1293_v12 = vpop.eup %1292  ;;  %1294 = vpow2.f32 %v1234_v10 }
 0x37c   :  { %v743_v61 = vadd.f32 1.0, %v1293_v12 }
 0x37e   :  { %1296 = vrcp.f32 %v743_v61  ;;  %v770_v42 = vand.u32 2147483648, %v743_v61  ;;  %vm764_vm6 = vweird.f32 %v743_v61  ;;  %v768_v49 = vand.u32 2147483647, %v743_v61 }
 0x380   :  { %v771_v36 = vor.u32 1.1754944e-38, %v770_v42  ;;  %vm769_vm8 = vcmp.eq.f32.partialorder %v768_v49, 8.507059e+37 }
 0x381   :  { %v1295_v63 = vpop.eup %1294 }
 0x382   :  { %v742_v54 = vadd.f32 1.0, %v1295_v63 }
 0x384   :  { %1298 = vrcp.f32 %v742_v54  ;;  %v1297_v17 = vpop.eup %1296  ;;  %v755_v14 = vand.u32 2147483648, %v742_v54  ;;  %v753_v21 = vand.u32 2147483647, %v742_v54  ;;  %vm749_vm2 = vweird.f32 %v742_v54 }
 0x385   :  { %v760_v16 = vmul.f32 %v1297_v17, %v743_v61  ;;  %vm765_vm5 = vweird.f32 %v1297_v17 }
 0x386   :  { %v756_v18 = vor.u32 1.1754944e-38, %v755_v14  ;;  %vm754_vm4 = vcmp.eq.f32.partialorder %v753_v21, 8.507059e+37  ;;  %vm766_vm7 = vmor %vm764_vm6, %vm765_vm5 }
 0x387   :  { %v761_v35 = vsub.f32 1.0, %v760_v16 }
 0x389   :  { %v762_v48 = vmul.f32 %v1297_v17, %v761_v35 }
 0x38a   :  { %v1299_v26 = vpop.eup %1298 }
 0x38b   :  { %v745_v62 = vmul.f32 %v1299_v26, %v742_v54  ;;  %vm750_vm1 = vweird.f32 %v1299_v26  ;;  %v763_v27 = vadd.f32 %v1297_v17, %v762_v48 }
 0x38c   :  { %vm751_vm3 = vmor %vm749_vm2, %vm750_vm1 }
 0x38d   :  { %v746_v51 = vsub.f32 1.0, %v745_v62  ;;  %v767_v32 = vsel %vm766_vm7, %v1297_v17, %v763_v27 }
 0x38e   :  { %v772_v40 = vsel %vm769_vm8, %v771_v36, %v767_v32 }
 0x38f   :  { %v747_v56 = vmul.f32 %v1299_v26, %v746_v51  ;;  %v797_v43 = vsub.f32 1.0, %v772_v40  ;;  %v799_v50 = vmul.f32 %v772_v40, %v2055_v57 }
 0x391   :  { %v748_v15 = vadd.f32 %v1299_v26, %v747_v56 }
 0x393   :  { %v752_v22 = vsel %vm751_vm3, %v1299_v26, %v748_v15 }
 0x394   :  { %v757_v24 = vsel %vm754_vm4, %v756_v18, %v752_v22 }
 0x395   :  { %v794_v46 = vmul.f32 %v792_v20, %v757_v24 }
 0x397   :  { %v795_v28 = vadd.f32 %v794_v46, %v2136_v39 }
 0x399   :  { %1300 = vtanh.f32 %v795_v28 }
 0x39f   :  { %v1301_v52 = vpop.eup %1300 }
 0x3a0   :  { %v798_v0 = vmul.f32 %v1301_v52, %v797_v43 }
 0x3a2   :  { %v2140_v53 = vadd.f32 %v799_v50, %v798_v0 }
 0x3a4   :  { %817 = vmatmul.f32.vlgmr.msra.gmra.mxu2 %v2140_v53  ;;  %837 = vmatmul.f32.vlgmr.msra.gmra.mxu3 %v2140_v53  ;;  %v916_v48 = vrot.slane %v2140_v53, 6 }
 0x3a5   :  { %903 = vmatmul.f32.vlgmr.msrb.gmra.mxu0 %v2140_v53  ;;  %1130 = vmatpush.msra.mxu2 %v2060_v2 }
 0x3a7   :  { %1131 = vmatpush.msra.mxu2 %v2065_v33 }
 0x3a9   :  { %1132 = vmatpush.msra.mxu2 %v2070_v58 }
 0x3ab   :  { %1133 = vmatpush.msra.mxu2 %v2075_v59 }
 0x3ad   :  { %1134 = vmatpush.msra.mxu2 %v2080_v37 }
 0x3af   :  { %1135 = vmatpush.msra.mxu2 %v2085_v41 }
 0x3b1   :  { %1136 = vmatpush.msra.mxu2 %v2090_v45 }
 0x3b3   :  { %1137 = vmatpush.msra.mxu2 %v2095_v30 }
 0x3b5   :  { %1138 = vmatpush.msra.mxu2 %v2100_v25 }
 0x3b7   :  { %1139 = vmatpush.msra.mxu2 %v2105_v6 }
 0x3b9   :  { %1140 = vmatpush.msra.mxu2 %v2109_v44 }
 0x3bb   :  { %1141 = vmatpush.msra.mxu2 %v2113_v23 }
 0x3bd   :  { %1142 = vmatpush.msra.mxu2 %v2117_v4 }
 0x3bf   :  { %1143 = vmatpush.msra.mxu2 %v2121_v11 }
 0x3c1   :  { %1144 = vmatpush.msra.mxu2 %v2124_v47 }
 0x3c3   :  { %1145 = vmatpush.msra.mxu2 %v2127_v19 }
 0x422   :  { %v904_v47 = vpop.f32.mrf.mxu0 }
 0x423   :  { %v905_v5 = vadd.f32 %v2257_v38, %v904_v47 }
 0x425   :  { %v908_v63 = vrot.slane %v905_v5, 6 }
 0x427   :  { %v818_v57 = vpop.f32.mrf.mxu2  ;;  %v838_v2 = vpop.f32.mrf.mxu3 }
 0x428   :  { %v843_v33 = vrot.slane %v818_v57, 6  ;;  %v844_v58 = vrot.slane %v838_v2, 6 }
 0x42a   :  { %v847_v59 = vadd.f32 %v843_v33, %v2259_v8  ;;  %v848_v37 = vadd.f32 %v844_v58, %v2258_v1  ;;  %v2171_v33 = vld [vmem:[%s2193_s4] ss:$0 sm:$0xff] }
 0x42c   :  { %v1236_v41 = vmul.f32 -1.442695, %v847_v59  ;;  %v1237_v45 = vmul.f32 -1.442695, %v848_v37 }
 0x42e   :  { %1302 = vpow2.f32 %v1236_v41 }
 0x42f   :  { %1304 = vpow2.f32 %v1237_v45 }
 0x434   :  { %v1303_v30 = vpop.eup %1302 }
 0x435   :  { %v1305_v25 = vpop.eup %1304  ;;  %v855_v6 = vadd.f32 1.0, %v1303_v30 }
 0x436   :  { %v856_v44 = vadd.f32 1.0, %v1305_v25 }
 0x437   :  { %1306 = vrcp.f32 %v855_v6  ;;  %v868_v60 = vand.u32 2147483648, %v855_v6  ;;  %v866_v9 = vand.u32 2147483647, %v855_v6  ;;  %vm862_vm10 = vweird.f32 %v855_v6 }
 0x438   :  { %1308 = vrcp.f32 %v856_v44  ;;  %v883_v26 = vand.u32 2147483648, %v856_v44  ;;  %vm877_vm14 = vweird.f32 %v856_v44  ;;  %v881_v35 = vand.u32 2147483647, %v856_v44 }
 0x439   :  { %v869_v61 = vor.u32 1.1754944e-38, %v868_v60  ;;  %vm867_vm12 = vcmp.eq.f32.partialorder %v866_v9, 8.507059e+37 }
 0x43a   :  { %v884_v14 = vor.u32 1.1754944e-38, %v883_v26  ;;  %vm882_vm0 = vcmp.eq.f32.partialorder %v881_v35, 8.507059e+37  ;;  %v1175_v26 = vld [vmem:[#allocation6 + $0x68] sm:$0xff]  ;;  %v1173_v35 = vld [vmem:[#allocation6 + $0x58] sm:$0xff] }
 0x43d   :  { %v1307_v23 = vpop.eup %1306 }
 0x43e   :  { %v1309_v4 = vpop.eup %1308  ;;  %v858_v11 = vmul.f32 %v1307_v23, %v855_v6  ;;  %vm863_vm9 = vweird.f32 %v1307_v23 }
 0x43f   :  { %v873_v19 = vmul.f32 %v1309_v4, %v856_v44  ;;  %vm864_vm11 = vmor %vm862_vm10, %vm863_vm9  ;;  %vm878_vm13 = vweird.f32 %v1309_v4 }
 0x440   :  { %v859_v55 = vsub.f32 1.0, %v858_v11  ;;  %vm879_vm15 = vmor %vm877_vm14, %vm878_vm13 }
 0x441   :  { %v874_v3 = vsub.f32 1.0, %v873_v19 }
 0x442   :  { %v860_v7 = vmul.f32 %v1307_v23, %v859_v55 }
 0x443   :  { %v875_v10 = vmul.f32 %v1309_v4, %v874_v3 }
 0x444   :  { %v861_v12 = vadd.f32 %v1307_v23, %v860_v7 }
 0x445   :  { %v876_v16 = vadd.f32 %v1309_v4, %v875_v10 }
 0x446   :  { %v865_v54 = vsel %vm864_vm11, %v1307_v23, %v861_v12 }
 0x447   :  { %v870_v17 = vsel %vm867_vm12, %v869_v61, %v865_v54  ;;  %v880_v51 = vsel %vm879_vm15, %v1309_v4, %v876_v16  ;;  %v1176_v16 = vld [vmem:[#allocation6 + $0x70] sm:$0xff] }
 0x448   :  { %v910_v62 = vmul.f32 %v908_v63, %v870_v17  ;;  %v885_v56 = vsel %vm882_vm0, %v884_v14, %v880_v51  ;;  %v1177_v17 = vld [vmem:[#allocation6 + $0x78] sm:$0xff]  ;;  %v1171_v51 = vld [vmem:[#allocation6 + $0x48] sm:$0xff] }
 0x449   :  { %v913_v21 = vsub.f32 1.0, %v885_v56  ;;  %v918_v18 = vmul.f32 %v916_v48, %v885_v56  ;;  %1185 = vmatpush.msra.mxu3 %v1177_v17 }
 0x44a   :  { %v911_v38 = vadd.f32 %v910_v62, %v2136_v39  ;;  %v1174_v62 = vld [vmem:[#allocation6 + $0x60] sm:$0xff] }
 0x44b   :  { %1186 = vmatpush.msra.mxu3 %v1176_v16  ;;  %v1205_v16 = vlaneseq }
 0x44c   :  { %1310 = vtanh.f32 %v911_v38  ;;  %v1172_v38 = vld [vmem:[#allocation6 + $0x50] sm:$0xff] }
 0x44d   :  { %1187 = vmatpush.msra.mxu3 %v1175_v26 }
 0x44f   :  { %1188 = vmatpush.msra.mxu3 %v1174_v62 }
 0x451   :  { %1189 = vmatpush.msra.mxu3 %v1173_v35  ;;  %v1206_v35 = vand.u32 127, %v1205_v16 }
 0x452   :  { %v1311_v13 = vpop.eup %1310 }
 0x453   :  { %v914_v15 = vmul.f32 %v1311_v13, %v913_v21  ;;  %1190 = vmatpush.msra.mxu3 %v1172_v38  ;;  %v1170_v13 = vld [vmem:[#allocation6 + $0x40] sm:$0xff] }
 0x455   :  { %v919_v20 = vadd.f32 %v918_v18, %v914_v15  ;;  %1191 = vmatpush.msra.mxu3 %v1171_v51 }
 0x457   :  { %v921_v22 = vrot.slane %v919_v20, 2  ;;  %v1037_v7 = vrot.slane %v919_v20, 6  ;;  %1192 = vmatpush.msra.mxu3 %v1170_v13  ;;  %v1169_v20 = vld [vmem:[#allocation6 + $0x38] sm:$0xff] }
 0x459   :  { %939 = vmatmul.f32.vlgmr.msrb.gmra.mxu1 %v921_v22  ;;  %959 = vmatmul.f32.vlgmr.msrb.gmra.mxu2 %v921_v22 }
 0x45a   :  { %1025 = vmatmul.f32.vlgmr.msrb.gmra.mxu3 %v921_v22 }
 0x45b   :  { %1193 = vmatpush.msra.mxu3 %v1169_v20 }
 0x4d6   :  { %v940_v24 = vpop.f32.mrf.mxu1 }
 0x4d7   :  { %v965_v27 = vrot.slane %v940_v24, 4 }
 0x4d9   :  { %v969_v29 = vadd.f32 %v965_v27, %v2259_v8  ;;  %v1168_v27 = vld [vmem:[#allocation6 + $0x30] sm:$0xff] }
 0x4da   :  { %1194 = vmatpush.msra.mxu3 %v1168_v27 }
 0x4db   :  { %v1238_v31 = vmul.f32 -1.442695, %v969_v29  ;;  %v1167_v29 = vld [vmem:[#allocation6 + $0x28] sm:$0xff] }
 0x4dc   :  { %v960_v34 = vpop.f32.mrf.mxu2  ;;  %1195 = vmatpush.msra.mxu3 %v1167_v29 }
 0x4dd   :  { %1312 = vpow2.f32 %v1238_v31  ;;  %v966_v42 = vrot.slane %v960_v34, 4  ;;  %v1026_v0 = vpop.f32.mrf.mxu3  ;;  %v1166_v31 = vld [vmem:[#allocation6 + $0x20] sm:$0xff]  ;;  %v1165_v34 = vld [vmem:[#allocation6 + $0x18] sm:$0xff] }
 0x4de   :  { %v1027_v58 = vadd.f32 %v2171_v33, %v1026_v0  ;;  %1196 = vmatpush.msra.mxu3 %v1166_v31 }
 0x4df   :  { %v970_v46 = vadd.f32 %v966_v42, %v2258_v1  ;;  %v1164_v42 = vld [vmem:[#allocation6 + $0x10] sm:$0xff] }
 0x4e0   :  { %v1030_v6 = vrot.slane %v1027_v58, 4  ;;  %1197 = vmatpush.msra.mxu3 %v1165_v34 }
 0x4e1   :  { %v1239_v49 = vmul.f32 -1.442695, %v970_v46 }
 0x4e2   :  { %1198 = vmatpush.msra.mxu3 %v1164_v42 }
 0x4e3   :  { %v1313_v28 = vpop.eup %1312  ;;  %1314 = vpow2.f32 %v1239_v49  ;;  %v1163_v49 = vld [vmem:[#allocation6 + $0x8] sm:$0xff] }
 0x4e4   :  { %v977_v32 = vadd.f32 1.0, %v1313_v28  ;;  %1199 = vmatpush.msra.mxu3 %v1163_v49 }
 0x4e6   :  { %1316 = vrcp.f32 %v977_v32  ;;  %v990_v53 = vand.u32 2147483648, %v977_v32  ;;  %v988_v2 = vand.u32 2147483647, %v977_v32  ;;  %vm984_vm2 = vweird.f32 %v977_v32 }
 0x4e8   :  { %v991_v45 = vor.u32 1.1754944e-38, %v990_v53  ;;  %vm989_vm4 = vcmp.eq.f32.partialorder %v988_v2, 8.507059e+37 }
 0x4e9   :  { %v1315_v36 = vpop.eup %1314 }
 0x4ea   :  { %v978_v40 = vadd.f32 1.0, %v1315_v36 }
 0x4ec   :  { %v1317_v43 = vpop.eup %1316  ;;  %1318 = vrcp.f32 %v978_v40  ;;  %v1005_v11 = vand.u32 2147483648, %v978_v40  ;;  %v1003_v47 = vand.u32 2147483647, %v978_v40  ;;  %vm999_vm6 = vweird.f32 %v978_v40 }
 0x4ed   :  { %v980_v52 = vmul.f32 %v1317_v43, %v977_v32  ;;  %vm985_vm1 = vweird.f32 %v1317_v43  ;;  %v1162_v32 = vld [vmem:[#allocation6] sm:$0xff] }
 0x4ee   :  { %vm986_vm3 = vmor %vm984_vm2, %vm985_vm1  ;;  %v1006_v3 = vor.u32 1.1754944e-38, %v1005_v11  ;;  %vm1004_vm8 = vcmp.eq.f32.partialorder %v1003_v47, 8.507059e+37  ;;  %1200 = vmatpush.msra.mxu3 %v1162_v32  ;;  %vm1211_vm1 = vcmp.lt.s32.totalorder %v1206_v35, 1 }
 0x4ef   :  { %v981_v50 = vsub.f32 1.0, %v980_v52 }
 0x4f1   :  { %v982_v57 = vmul.f32 %v1317_v43, %v981_v50 }
 0x4f2   :  { %v1319_v59 = vpop.eup %1318 }
 0x4f3   :  { %v995_v37 = vmul.f32 %v1319_v59, %v978_v40  ;;  %v983_v41 = vadd.f32 %v1317_v43, %v982_v57  ;;  %vm1000_vm5 = vweird.f32 %v1319_v59 }
 0x4f4   :  { %vm1001_vm7 = vmor %vm999_vm6, %vm1000_vm5 }
 0x4f5   :  { %v996_v30 = vsub.f32 1.0, %v995_v37  ;;  %v987_v25 = vsel %vm986_vm3, %v1317_v43, %v983_v41 }
 0x4f6   :  { %v992_v44 = vsel %vm989_vm4, %v991_v45, %v987_v25 }
 0x4f7   :  { %v997_v23 = vmul.f32 %v1319_v59, %v996_v30  ;;  %v1032_v4 = vmul.f32 %v1030_v6, %v992_v44 }
 0x4f9   :  { %v1033_v19 = vadd.f32 %v1032_v4, %v2136_v39  ;;  %v998_v55 = vadd.f32 %v1319_v59, %v997_v23 }
 0x4fb   :  { %1320 = vtanh.f32 %v1033_v19  ;;  %v1002_v60 = vsel %vm1001_vm7, %v1319_v59, %v998_v55 }
 0x4fc   :  { %v1007_v5 = vsel %vm1004_vm8, %v1006_v3, %v1002_v60 }
 0x4fd   :  { %v1035_v9 = vsub.f32 1.0, %v1007_v5  ;;  %v1039_v61 = vmul.f32 %v1037_v7, %v1007_v5 }
 0x501   :  { %v1321_v10 = vpop.eup %1320 }
 0x502   :  { %v1036_v12 = vmul.f32 %v1321_v10, %v1035_v9 }
 0x504   :  { %v2175_v63 = vadd.f32 %v1039_v61, %v1036_v12  ;;  %v1251_v61 = vld [vmem:[%s2195_s6] ss:$0 sm:$0xff] }
 0x506   :  { %v1042_v54 = vrot.slane %v2175_v63, 4  ;;  %v1158_v60 = vrot.slane %v2175_v63, 6 }
 0x508   :  { %1060 = vmatmul.f32.vlgmr.msra.gmra.mxu0 %v1042_v54  ;;  %1080 = vmatmul.f32.vlgmr.msra.gmra.mxu1 %v1042_v54 }
 0x509   :  { %1146 = vmatmul.f32.vlgmr.msra.gmra.mxu2 %v1042_v54 }
 0x585   :  { %v1061_v14 = vpop.f32.mrf.mxu0  ;;  %v1081_v56 = vpop.f32.mrf.mxu1 }
 0x586   :  { %v1086_v21 = vrot.slane %v1061_v14, 2  ;;  %v1087_v48 = vrot.slane %v1081_v56, 2 }
 0x588   :  { %v1090_v15 = vadd.f32 %v1086_v21, %v2259_v8  ;;  %v1091_v18 = vadd.f32 %v1087_v48, %v2258_v1 }
 0x58a   :  { %v1240_v22 = vmul.f32 -1.442695, %v1090_v15  ;;  %v1241_v24 = vmul.f32 -1.442695, %v1091_v18 }
 0x58c   :  { %1322 = vpow2.f32 %v1240_v22  ;;  %v1147_v0 = vpop.f32.mrf.mxu2 }
 0x58d   :  { %1324 = vpow2.f32 %v1241_v24  ;;  %v1148_v59 = vadd.f32 %v2171_v33, %v1147_v0 }
 0x58f   :  { %v1151_v25 = vrot.slane %v1148_v59, 2 }
 0x592   :  { %v1323_v46 = vpop.eup %1322 }
 0x593   :  { %v1325_v8 = vpop.eup %1324  ;;  %v1098_v28 = vadd.f32 1.0, %v1323_v46 }
 0x594   :  { %v1099_v1 = vadd.f32 1.0, %v1325_v8 }
 0x595   :  { %1326 = vrcp.f32 %v1098_v28  ;;  %v1111_v57 = vand.u32 2147483648, %v1098_v28  ;;  %v1109_v58 = vand.u32 2147483647, %v1098_v28  ;;  %vm1105_vm10 = vweird.f32 %v1098_v28 }
 0x596   :  { %1328 = vrcp.f32 %v1099_v1  ;;  %v1126_v4 = vand.u32 2147483648, %v1099_v1  ;;  %vm1120_vm14 = vweird.f32 %v1099_v1  ;;  %v1124_v11 = vand.u32 2147483647, %v1099_v1 }
 0x597   :  { %v1112_v45 = vor.u32 1.1754944e-38, %v1111_v57  ;;  %vm1110_vm12 = vcmp.eq.f32.partialorder %v1109_v58, 8.507059e+37 }
 0x598   :  { %v1127_v33 = vor.u32 1.1754944e-38, %v1126_v4  ;;  %vm1125_vm0 = vcmp.eq.f32.partialorder %v1124_v11, 8.507059e+37 }
 0x59b   :  { %v1327_v36 = vpop.eup %1326 }
 0x59c   :  { %v1329_v40 = vpop.eup %1328  ;;  %v1101_v43 = vmul.f32 %v1327_v36, %v1098_v28  ;;  %vm1106_vm9 = vweird.f32 %v1327_v36 }
 0x59d   :  { %v1116_v52 = vmul.f32 %v1329_v40, %v1099_v1  ;;  %vm1107_vm11 = vmor %vm1105_vm10, %vm1106_vm9  ;;  %vm1121_vm13 = vweird.f32 %v1329_v40 }
 0x59e   :  { %v1102_v50 = vsub.f32 1.0, %v1101_v43  ;;  %vm1122_vm15 = vmor %vm1120_vm14, %vm1121_vm13 }
 0x59f   :  { %v1117_v53 = vsub.f32 1.0, %v1116_v52 }
 0x5a0   :  { %v1103_v2 = vmul.f32 %v1327_v36, %v1102_v50 }
 0x5a1   :  { %v1118_v37 = vmul.f32 %v1329_v40, %v1117_v53 }
 0x5a2   :  { %v1104_v41 = vadd.f32 %v1327_v36, %v1103_v2 }
 0x5a3   :  { %v1119_v44 = vadd.f32 %v1329_v40, %v1118_v37 }
 0x5a4   :  { %v1108_v30 = vsel %vm1107_vm11, %v1327_v36, %v1104_v41 }
 0x5a5   :  { %v1113_v6 = vsel %vm1110_vm12, %v1112_v45, %v1108_v30  ;;  %v1123_v19 = vsel %vm1122_vm15, %v1329_v40, %v1119_v44 }
 0x5a6   :  { %v1153_v23 = vmul.f32 %v1151_v25, %v1113_v6  ;;  %v1128_v55 = vsel %vm1125_vm0, %v1127_v33, %v1123_v19 }
 0x5a7   :  { %v1156_v3 = vsub.f32 1.0, %v1128_v55  ;;  %v1160_v9 = vmul.f32 %v1158_v60, %v1128_v55 }
 0x5a8   :  { %v1154_v47 = vadd.f32 %v1153_v23, %v2136_v39 }
 0x5aa   :  { %1330 = vtanh.f32 %v1154_v47 }
 0x5b0   :  { %v1331_v5 = vpop.eup %1330 }
 0x5b1   :  { %v1157_v7 = vmul.f32 %v1331_v5, %v1156_v3 }
 0x5b3   :  { %v1161_v10 = vadd.f32 %v1160_v9, %v1157_v7 }
 0x5b5   :  { %v1183_v12 = vrot.slane %v1161_v10, 6 }
 0x5b7   :  { %1201 = vmatmul.f32.vlgmr.msra.gmra.mxu3 %v1183_v12 }
 0x63a   :  { %v1202_v39 = vpop.f32.mrf.mxu3 }
 0x63b   :  { %v1203_v54 = vadd.f32 %v1251_v61, %v1202_v39 }
 0x63d   :  { %v1207_v17 = vmax.f32 %v1203_v54, -20.0 }
 0x63f   :  { %v1208_v26 = vmin.f32 %v1207_v17, 2.0 }
 0x641   :  { %v1209_v62 = vmul.f32 1.442695, %v1208_v26 }
 0x643   :  { %1332 = vpow2.f32 %v1209_v62 }
 0x649   :  { %v1333_v63 = vpop.eup %1332 }
 0x64a   :  { %v1212_v38 = vsel %vm1211_vm1, %v1203_v54, %v1333_v63 }
 0x64b   :  { %1213 = vst [vmem:[%s2196_s7] sm:$0x3] %v1212_v38 }
 0x64c   :  { %1218 = vsyncpa [#allocation3], 1 }
 0x64d   :  { %1219 = vsyncpa [#allocation5], 1 }

</bundles_post_ra>
